<compile_context>
chip_gen: v7x
topology: tpu7x:2x2x1
jax: 0.10.0
libtpu: 0.0.40
codegen_flags: <defaults>
</compile_context>

<pallas_src>
import functools

import jax
import jax.numpy as jnp
from jax import lax
from jax.experimental import pallas as pl
from jax.experimental.pallas import tpu as pltpu


def position_attention_kernel(f_ref, x_ref, wc_ref, wd_ref, wb_ref, wa_ref, o_ref,
                              *, n, p, hw):
    f = f_ref[...]            # [N*P, Cin]   f32 pooled features, channel-last
    x = x_ref[...]            # [N, HW, Cin] f32 input pixels, channel-last
    wc = wc_ref[...]          # [1, Cin]     f32 F_to_C weight
    wd = wd_ref[...]          # [Cin, Cin]   bf16 F_to_D weight  (Cout, Cin)
    wb = wb_ref[...]          # [1, Cin]     f32 Input_to_B weight
    wa = wa_ref[...]          # [Cin, Cin]   bf16 alpha weight   (Cout, Cin)

    contract_last = (((1,), (1,)), ((), ()))  # contract channel axis of both operands

    # Single-output-channel 1x1 convs -> VPU multiply + lane reduce (keep off the MXU).
    b_all = jnp.maximum(jnp.sum(x * wb, axis=-1, keepdims=True), 0.0)     # [N, HW, 1]
    c_all = jnp.maximum(jnp.sum(f * wc, axis=-1, keepdims=True), 0.0)     # [N*P, 1]

    # F_to_D: real matmul, bf16 operands on the MXU, f32 accumulation, f32 ReLU.
    d_all = jnp.maximum(
        lax.dot_general(f.astype(jnp.bfloat16), wd, contract_last,
                        preferred_element_type=jnp.float32),
        0.0)                                                              # [N*P, Cin]

    # Per-batch pooled attention (tiny static unroll; N is small).
    for bi in range(n):
        b_b = b_all[bi]                                   # [HW, 1]
        c_b = c_all[bi * p:(bi + 1) * p, :]               # [P, 1]
        d_b = d_all[bi * p:(bi + 1) * p, :]               # [P, Cin]

        # Outer product b c^T as a broadcast multiply (K=1 -> VPU, not MXU).
        logits = b_b * jnp.transpose(c_b)                 # [HW, P]

        # Softmax over the pooled positions, all in f32.
        m = jnp.max(logits, axis=-1, keepdims=True)
        e = jnp.exp(logits - m)
        inv = pl.reciprocal(jnp.sum(e, axis=-1, keepdims=True), approx=True)
        s = e * inv                                       # [HW, P]

        # E = S @ D   (bf16 operands, f32 accumulation).
        attn = jnp.dot(s.astype(jnp.bfloat16), d_b.astype(jnp.bfloat16),
                       preferred_element_type=jnp.float32)                # [HW, Cin]

        # alpha 1x1 conv (bf16 MXU, f32 accumulate) + f32 residual.
        out_b = lax.dot_general(attn.astype(jnp.bfloat16), wa, contract_last,
                                preferred_element_type=jnp.float32) + x[bi]
        o_ref[bi] = out_b.astype(o_ref.dtype)


def _adaptive_avg_pool_flat(x, k):
    # Exact AdaptiveAvgPool2d(k) when H % k == 0 and W % k == 0, flattened row-major.
    n, c, h, w = x.shape
    xr = x.reshape(n, c, k, h // k, k, w // k)
    return xr.mean(axis=(3, 5)).reshape(n, c, k * k)          # [N, C, k*k]


def position_attention(x, wc, wd, wb, wa):
    """x: [N, Cin, H, W] (NCHW, Cin must be 256 to match the PyTorch reshapes)."""
    n, cin, h, w = x.shape
    hw = h * w

    # TODO(synk): for production H*W, fuse the pooling pyramid + NCHW<->channel-last
    # transposes into the kernel and add an HW-tiled "parallel" grid axis (tile sized
    # per generation's VMEM); at H=W=6 they are noise, so they stay as wrapper glue.
    pools = [_adaptive_avg_pool_flat(x, k) for k in (1, 2, 3, 6)]
    f_nc = jnp.concatenate(pools, axis=-1)                    # [N, Cin, P]
    p = f_nc.shape[-1]

    f_flat = jnp.transpose(f_nc, (0, 2, 1)).reshape(n * p, cin)      # [N*P, Cin]
    x_cl = jnp.transpose(x.reshape(n, cin, hw), (0, 2, 1))           # [N, HW, Cin]

    # The two big weights travel HBM->VMEM in bf16 (halves the dominant DMA bytes);
    # the single-output-channel weights stay f32 (VPU-only use).
    wd_bf16 = wd.astype(jnp.bfloat16)
    wa_bf16 = wa.astype(jnp.bfloat16)

    kernel = functools.partial(position_attention_kernel, n=n, p=p, hw=hw)

    out_cl = pl.pallas_call(
        kernel,
        out_shape=jax.ShapeDtypeStruct((n, hw, cin), x.dtype),
        grid_spec=pltpu.PrefetchScalarGridSpec(
            num_scalar_prefetch=0,
            grid=(1,),                                   # whole problem in one step
            in_specs=[
                pl.BlockSpec((n * p, cin), lambda i: (0, 0)),
                pl.BlockSpec((n, hw, cin), lambda i: (0, 0, 0)),
                pl.BlockSpec((1, cin), lambda i: (0, 0)),
                pl.BlockSpec((cin, cin), lambda i: (0, 0)),
                pl.BlockSpec((1, cin), lambda i: (0, 0)),
                pl.BlockSpec((cin, cin), lambda i: (0, 0)),
            ],
            out_specs=pl.BlockSpec((n, hw, cin), lambda i: (0, 0, 0)),
        ),
        compiler_params=pltpu.CompilerParams(dimension_semantics=("parallel",)),
    )(f_flat, x_cl, wc, wd_bf16, wb, wa_bf16)

    return jnp.transpose(out_cl, (0, 2, 1)).reshape(n, cin, h, w)


def position_attention_ref(x, wc, wd, wb, wa):
    """Pure-JAX f32 reference mirroring the PyTorch forward."""
    n, cin, h, w = x.shape
    pools = [_adaptive_avg_pool_flat(x, k) for k in (1, 2, 3, 6)]
    f = jnp.concatenate(pools, axis=-1)                                  # [N, Cin, P]
    c = jnp.maximum(jnp.einsum("oc,ncp->nop", wc, f), 0.0)[:, 0, :]      # [N, P]
    d = jnp.maximum(jnp.einsum("oc,ncp->nop", wd, f), 0.0)               # [N, Cin, P]
    b = jnp.maximum(jnp.einsum("oc,nchw->nohw", wb, x), 0.0).reshape(n, -1)  # [N, HW]
    logits = b[:, :, None] * c[:, None, :]                               # [N, HW, P]
    s = jax.nn.softmax(logits, axis=-1)
    e = jnp.einsum("npj,ncj->ncp", s, d)                                 # [N, Cin, HW]
    out = jnp.einsum("oc,ncp->nop", wa, e) + x.reshape(n, cin, -1)
    return out.reshape(n, cin, h, w)


if __name__ == "__main__":
    key = jax.random.PRNGKey(0)
    kx, k1, k2, k3, k4 = jax.random.split(key, 5)

    # Cin = 256 is required by the module's hard-coded reshapes; H = W = 6 keeps it
    # small and is exactly divisible by every pool size (1, 2, 3, 6).
    N, CIN, H, W = 2, 256, 6, 6
    x = jax.random.normal(kx, (N, CIN, H, W), dtype=jnp.float32)
    w_c = jax.random.normal(k1, (1, CIN), dtype=jnp.float32) * 0.05     # F_to_C
    w_d = jax.random.normal(k2, (CIN, CIN), dtype=jnp.float32) * 0.05   # F_to_D
    w_b = jax.random.normal(k3, (1, CIN), dtype=jnp.float32) * 0.05     # Input_to_B
    w_a = jax.random.normal(k4, (CIN, CIN), dtype=jnp.float32) * 0.05   # alpha

    out = jax.block_until_ready(position_attention(x, w_c, w_d, w_b, w_a))

    ref = position_attention_ref(x, w_c, w_d, w_b, w_a)
    assert out.shape == (N, CIN, H, W)
    # bf16 MXU operands (f32 accumulation) + approx reciprocal vs. a pure-f32
    # reference -> tolerance sized for mixed precision.
    max_err = float(jnp.max(jnp.abs(out - ref)))
    assert max_err < 5e-2, f"mismatch vs reference: {max_err}"
    print("KERNEL_OK")
</pallas_src>

<mosaic_0001>
module attributes {stable_mosaic.version = 11 : i64} {
  func.func @position_attention_kernel(%arg0: i32, %arg1: memref<100x256xf32, #tpu.memory_space<vmem>>, %arg2: memref<2x36x256xf32, #tpu.memory_space<vmem>>, %arg3: memref<1x256xf32, #tpu.memory_space<vmem>>, %arg4: memref<256x256xbf16, #tpu.memory_space<vmem>>, %arg5: memref<1x256xf32, #tpu.memory_space<vmem>>, %arg6: memref<256x256xbf16, #tpu.memory_space<vmem>>, %arg7: memref<2x36x256xf32, #tpu.memory_space<vmem>>) attributes {dimension_semantics = [#tpu.dimension_semantics<parallel>], iteration_bounds = array<i64: 1>, scalar_prefetch = 0 : i64, scratch_operands = 0 : i64, tpu.core_type = #tpu.core_type<tc>, window_params = [{pipeline_mode = #tpu.pipeline_mode<synchronous>, transform_indices = @transform_0, window_bounds = array<i64: 100, 256>}, {pipeline_mode = #tpu.pipeline_mode<synchronous>, transform_indices = @transform_1, window_bounds = array<i64: 2, 36, 256>}, {pipeline_mode = #tpu.pipeline_mode<synchronous>, transform_indices = @transform_2, window_bounds = array<i64: 1, 256>}, {pipeline_mode = #tpu.pipeline_mode<synchronous>, transform_indices = @transform_3, window_bounds = array<i64: 256, 256>}, {pipeline_mode = #tpu.pipeline_mode<synchronous>, transform_indices = @transform_4, window_bounds = array<i64: 1, 256>}, {pipeline_mode = #tpu.pipeline_mode<synchronous>, transform_indices = @transform_5, window_bounds = array<i64: 256, 256>}, {pipeline_mode = #tpu.pipeline_mode<synchronous>, transform_indices = @transform_6, window_bounds = array<i64: 2, 36, 256>}]} {
    %c0 = arith.constant 0 : index
    %c0_0 = arith.constant 0 : index
    %0 = vector.load %arg1[%c0, %c0_0] : memref<100x256xf32, #tpu.memory_space<vmem>>, vector<100x256xf32>
    %c0_1 = arith.constant 0 : index
    %c0_2 = arith.constant 0 : index
    %c0_3 = arith.constant 0 : index
    %1 = vector.load %arg2[%c0_1, %c0_2, %c0_3] : memref<2x36x256xf32, #tpu.memory_space<vmem>>, vector<2x36x256xf32>
    %c0_4 = arith.constant 0 : index
    %c0_5 = arith.constant 0 : index
    %2 = vector.load %arg3[%c0_4, %c0_5] : memref<1x256xf32, #tpu.memory_space<vmem>>, vector<1x256xf32>
    %c0_6 = arith.constant 0 : index
    %c0_7 = arith.constant 0 : index
    %3 = vector.load %arg4[%c0_6, %c0_7] : memref<256x256xbf16, #tpu.memory_space<vmem>>, vector<256x256xbf16>
    %c0_8 = arith.constant 0 : index
    %c0_9 = arith.constant 0 : index
    %4 = vector.load %arg5[%c0_8, %c0_9] : memref<1x256xf32, #tpu.memory_space<vmem>>, vector<1x256xf32>
    %c0_10 = arith.constant 0 : index
    %c0_11 = arith.constant 0 : index
    %5 = vector.load %arg6[%c0_10, %c0_11] : memref<256x256xbf16, #tpu.memory_space<vmem>>, vector<256x256xbf16>
    %6 = vector.shape_cast %4 : vector<1x256xf32> to vector<1x1x256xf32>
    %7 = vector.broadcast %6 : vector<1x1x256xf32> to vector<2x36x256xf32>
    %8 = arith.mulf %1, %7 : vector<2x36x256xf32>
    %cst = arith.constant dense<0.000000e+00> : vector<2x36xf32>
    %9 = vector.multi_reduction <add>, %8, %cst [2] : vector<2x36x256xf32> to vector<2x36xf32>
    %10 = vector.shape_cast %9 : vector<2x36xf32> to vector<2x36x1xf32>
    %cst_12 = arith.constant 0.000000e+00 : f32
    %11 = vector.broadcast %cst_12 : f32 to vector<2x36x1xf32>
    %12 = arith.maximumf %10, %11 : vector<2x36x1xf32>
    %13 = vector.broadcast %2 : vector<1x256xf32> to vector<100x256xf32>
    %14 = arith.mulf %0, %13 : vector<100x256xf32>
    %cst_13 = arith.constant dense<0.000000e+00> : vector<100xf32>
    %15 = vector.multi_reduction <add>, %14, %cst_13 [1] : vector<100x256xf32> to vector<100xf32>
    %16 = vector.shape_cast %15 : vector<100xf32> to vector<100x1xf32>
    %cst_14 = arith.constant 0.000000e+00 : f32
    %17 = vector.broadcast %cst_14 : f32 to vector<100x1xf32>
    %18 = arith.maximumf %16, %17 : vector<100x1xf32>
    %19 = arith.truncf %0 : vector<100x256xf32> to vector<100x256xbf16>
    %cst_15 = arith.constant dense<0.000000e+00> : vector<100x256xf32>
    %20 = tpu.matmul %19, %3, %cst_15 {dimension_numbers = #tpu.dot_dimension_numbers<[1], [1], [0], [0], [0, 0, 1, 0], [], []>} : vector<100x256xbf16>, vector<256x256xbf16>, vector<100x256xf32> -> vector<100x256xf32>
    %cst_16 = arith.constant 0.000000e+00 : f32
    %21 = vector.broadcast %cst_16 : f32 to vector<100x256xf32>
    %22 = arith.maximumf %20, %21 : vector<100x256xf32>
    %23 = vector.extract_strided_slice %12 {offsets = [0, 0, 0], sizes = [1, 36, 1], strides = [1, 1, 1]} : vector<2x36x1xf32> to vector<1x36x1xf32>
    %24 = vector.shape_cast %23 : vector<1x36x1xf32> to vector<36x1xf32>
    %25 = vector.extract_strided_slice %18 {offsets = [0, 0], sizes = [50, 1], strides = [1, 1]} : vector<100x1xf32> to vector<50x1xf32>
    %26 = vector.extract_strided_slice %22 {offsets = [0, 0], sizes = [50, 256], strides = [1, 1]} : vector<100x256xf32> to vector<50x256xf32>
    %27 = tpu.transpose %25, [1, 0] : vector<50x1xf32> -> vector<1x50xf32>
    %28 = vector.broadcast %24 : vector<36x1xf32> to vector<36x50xf32>
    %29 = vector.broadcast %27 : vector<1x50xf32> to vector<36x50xf32>
    %30 = arith.mulf %28, %29 : vector<36x50xf32>
    %cst_17 = arith.constant dense<0xFF800000> : vector<36xf32>
    %31 = vector.multi_reduction <maximumf>, %30, %cst_17 [1] : vector<36x50xf32> to vector<36xf32>
    %32 = vector.shape_cast %31 : vector<36xf32> to vector<36x1xf32>
    %33 = vector.broadcast %32 : vector<36x1xf32> to vector<36x50xf32>
    %34 = arith.subf %30, %33 : vector<36x50xf32>
    %35 = math.exp %34 : vector<36x50xf32>
    %cst_18 = arith.constant dense<0.000000e+00> : vector<36xf32>
    %36 = vector.multi_reduction <add>, %35, %cst_18 [1] : vector<36x50xf32> to vector<36xf32>
    %37 = vector.shape_cast %36 : vector<36xf32> to vector<36x1xf32>
    %38 = tpu.reciprocal %37 {approx = true} : vector<36x1xf32> -> vector<36x1xf32>
    %39 = vector.broadcast %38 : vector<36x1xf32> to vector<36x50xf32>
    %40 = arith.mulf %35, %39 : vector<36x50xf32>
    %41 = arith.truncf %40 : vector<36x50xf32> to vector<36x50xbf16>
    %42 = arith.truncf %26 : vector<50x256xf32> to vector<50x256xbf16>
    %cst_19 = arith.constant dense<0.000000e+00> : vector<36x256xf32>
    %43 = tpu.matmul %41, %42, %cst_19 {dimension_numbers = #tpu.dot_dimension_numbers<[1], [0], [0], [1], [0, 0, 1, 1], [], []>} : vector<36x50xbf16>, vector<50x256xbf16>, vector<36x256xf32> -> vector<36x256xf32>
    %44 = arith.truncf %43 : vector<36x256xf32> to vector<36x256xbf16>
    %cst_20 = arith.constant dense<0.000000e+00> : vector<36x256xf32>
    %45 = tpu.matmul %44, %5, %cst_20 {dimension_numbers = #tpu.dot_dimension_numbers<[1], [1], [0], [0], [0, 0, 1, 0], [], []>} : vector<36x256xbf16>, vector<256x256xbf16>, vector<36x256xf32> -> vector<36x256xf32>
    %46 = vector.extract_strided_slice %1 {offsets = [0, 0, 0], sizes = [1, 36, 256], strides = [1, 1, 1]} : vector<2x36x256xf32> to vector<1x36x256xf32>
    %47 = vector.shape_cast %46 : vector<1x36x256xf32> to vector<36x256xf32>
    %48 = arith.addf %45, %47 : vector<36x256xf32>
    %c0_21 = arith.constant 0 : index
    %c0_22 = arith.constant 0 : index
    %c0_23 = arith.constant 0 : index
    %49 = vector.load %arg7[%c0_21, %c0_22, %c0_23] : memref<2x36x256xf32, #tpu.memory_space<vmem>>, vector<1x36x256xf32>
    %50 = vector.shape_cast %49 : vector<1x36x256xf32> to vector<36x256xf32>
    %51 = vector.shape_cast %48 : vector<36x256xf32> to vector<1x36x256xf32>
    tpu.vector_store %arg7[%c0_21, %c0_22, %c0_23], %51 {strides = array<i32>} : memref<2x36x256xf32, #tpu.memory_space<vmem>>, vector<1x36x256xf32>,
    %52 = vector.extract_strided_slice %12 {offsets = [1, 0, 0], sizes = [1, 36, 1], strides = [1, 1, 1]} : vector<2x36x1xf32> to vector<1x36x1xf32>
    %53 = vector.shape_cast %52 : vector<1x36x1xf32> to vector<36x1xf32>
    %54 = vector.extract_strided_slice %18 {offsets = [50, 0], sizes = [50, 1], strides = [1, 1]} : vector<100x1xf32> to vector<50x1xf32>
    %55 = vector.extract_strided_slice %22 {offsets = [50, 0], sizes = [50, 256], strides = [1, 1]} : vector<100x256xf32> to vector<50x256xf32>
    %56 = tpu.transpose %54, [1, 0] : vector<50x1xf32> -> vector<1x50xf32>
    %57 = vector.broadcast %53 : vector<36x1xf32> to vector<36x50xf32>
    %58 = vector.broadcast %56 : vector<1x50xf32> to vector<36x50xf32>
    %59 = arith.mulf %57, %58 : vector<36x50xf32>
    %cst_24 = arith.constant dense<0xFF800000> : vector<36xf32>
    %60 = vector.multi_reduction <maximumf>, %59, %cst_24 [1] : vector<36x50xf32> to vector<36xf32>
    %61 = vector.shape_cast %60 : vector<36xf32> to vector<36x1xf32>
    %62 = vector.broadcast %61 : vector<36x1xf32> to vector<36x50xf32>
    %63 = arith.subf %59, %62 : vector<36x50xf32>
    %64 = math.exp %63 : vector<36x50xf32>
    %cst_25 = arith.constant dense<0.000000e+00> : vector<36xf32>
    %65 = vector.multi_reduction <add>, %64, %cst_25 [1] : vector<36x50xf32> to vector<36xf32>
    %66 = vector.shape_cast %65 : vector<36xf32> to vector<36x1xf32>
    %67 = tpu.reciprocal %66 {approx = true} : vector<36x1xf32> -> vector<36x1xf32>
    %68 = vector.broadcast %67 : vector<36x1xf32> to vector<36x50xf32>
    %69 = arith.mulf %64, %68 : vector<36x50xf32>
    %70 = arith.truncf %69 : vector<36x50xf32> to vector<36x50xbf16>
    %71 = arith.truncf %55 : vector<50x256xf32> to vector<50x256xbf16>
    %cst_26 = arith.constant dense<0.000000e+00> : vector<36x256xf32>
    %72 = tpu.matmul %70, %71, %cst_26 {dimension_numbers = #tpu.dot_dimension_numbers<[1], [0], [0], [1], [0, 0, 1, 1], [], []>} : vector<36x50xbf16>, vector<50x256xbf16>, vector<36x256xf32> -> vector<36x256xf32>
    %73 = arith.truncf %72 : vector<36x256xf32> to vector<36x256xbf16>
    %cst_27 = arith.constant dense<0.000000e+00> : vector<36x256xf32>
    %74 = tpu.matmul %73, %5, %cst_27 {dimension_numbers = #tpu.dot_dimension_numbers<[1], [1], [0], [0], [0, 0, 1, 0], [], []>} : vector<36x256xbf16>, vector<256x256xbf16>, vector<36x256xf32> -> vector<36x256xf32>
    %75 = vector.extract_strided_slice %1 {offsets = [1, 0, 0], sizes = [1, 36, 256], strides = [1, 1, 1]} : vector<2x36x256xf32> to vector<1x36x256xf32>
    %76 = vector.shape_cast %75 : vector<1x36x256xf32> to vector<36x256xf32>
    %77 = arith.addf %74, %76 : vector<36x256xf32>
    %c1 = arith.constant 1 : index
    %c0_28 = arith.constant 0 : index
    %c0_29 = arith.constant 0 : index
    %78 = vector.load %arg7[%c1, %c0_28, %c0_29] : memref<2x36x256xf32, #tpu.memory_space<vmem>>, vector<1x36x256xf32>
    %79 = vector.shape_cast %78 : vector<1x36x256xf32> to vector<36x256xf32>
    %80 = vector.shape_cast %77 : vector<36x256xf32> to vector<1x36x256xf32>
    tpu.vector_store %arg7[%c1, %c0_28, %c0_29], %80 {strides = array<i32>} : memref<2x36x256xf32, #tpu.memory_space<vmem>>, vector<1x36x256xf32>,
    return
  }
  func.func @transform_0(%arg0: i32) -> (i32, i32) {
    %c0_i32 = arith.constant 0 : i32
    %c0_i32_0 = arith.constant 0 : i32
    %c0_i32_1 = arith.constant 0 : i32
    return %c0_i32, %c0_i32_0 : i32, i32
  }
  func.func @transform_1(%arg0: i32) -> (i32, i32, i32) {
    %c0_i32 = arith.constant 0 : i32
    %c0_i32_0 = arith.constant 0 : i32
    %c0_i32_1 = arith.constant 0 : i32
    %c0_i32_2 = arith.constant 0 : i32
    return %c0_i32, %c0_i32_0, %c0_i32_1 : i32, i32, i32
  }
  func.func @transform_2(%arg0: i32) -> (i32, i32) {
    %c0_i32 = arith.constant 0 : i32
    %c0_i32_0 = arith.constant 0 : i32
    %c0_i32_1 = arith.constant 0 : i32
    return %c0_i32, %c0_i32_0 : i32, i32
  }
  func.func @transform_3(%arg0: i32) -> (i32, i32) {
    %c0_i32 = arith.constant 0 : i32
    %c0_i32_0 = arith.constant 0 : i32
    %c0_i32_1 = arith.constant 0 : i32
    return %c0_i32, %c0_i32_0 : i32, i32
  }
  func.func @transform_4(%arg0: i32) -> (i32, i32) {
    %c0_i32 = arith.constant 0 : i32
    %c0_i32_0 = arith.constant 0 : i32
    %c0_i32_1 = arith.constant 0 : i32
    return %c0_i32, %c0_i32_0 : i32, i32
  }
  func.func @transform_5(%arg0: i32) -> (i32, i32) {
    %c0_i32 = arith.constant 0 : i32
    %c0_i32_0 = arith.constant 0 : i32
    %c0_i32_1 = arith.constant 0 : i32
    return %c0_i32, %c0_i32_0 : i32, i32
  }
  func.func @transform_6(%arg0: i32) -> (i32, i32, i32) {
    %c0_i32 = arith.constant 0 : i32
    %c0_i32_0 = arith.constant 0 : i32
    %c0_i32_1 = arith.constant 0 : i32
    %c0_i32_2 = arith.constant 0 : i32
    return %c0_i32, %c0_i32_0, %c0_i32_1 : i32, i32, i32
  }
}

</mosaic_0001>

<bundles_post_ra>
// kernel: tpu_custom_call.1
= control target key start
LH: loop header
LB: loop body
LE: loop exit
PB: predicated region body
PF: predicated region fallthrough
CT: control target
= control target key end

     0   :  { %11 = vsyncpa [#allocation3], 0  ;;  %s2363_s0 = inlined_call_operand.hbm [shape: f32[100,256], index: 0, kind: input, shape index: {}]   ;;  %s2364_s1 = inlined_call_operand.vmem [shape: f32[2,36,256], index: 1, kind: input, shape index: {}]   ;;  %s2365_s2 = inlined_call_operand.vmem [shape: f32[1,256], index: 2, kind: input, shape index: {}]   ;;  %s2366_s3 = inlined_call_operand.vmem [shape: bf16[256,256], index: 3, kind: input, shape index: {}]   ;;  %s2367_s4 = inlined_call_operand.vmem [shape: f32[1,256], index: 4, kind: input, shape index: {}]   ;;  %s2368_s5 = inlined_call_operand.hbm [shape: bf16[256,256], index: 5, kind: input, shape index: {}]   ;;  %s2369_s6 = inlined_call_operand.vmem [shape: f32[2,36,256], index: 6, kind: output, shape index: {}]  }
   0x1   :  { %12 = vsyncpa [#allocation5], 0  ;;  %s1663_s21 = smov [#allocation2]   ;;  %s1615_s25 = scalar_lea.hbm %s2363_s0, 3328 }
   0x2   :  { %s18_s22 = sshll.u32 %s1663_s21, 4  ;;  %p1616_p0 = scmp.ne.s32.totalorder %s2363_s0, %s1615_s25  ;;  %s19_s22 = int_to_ptr.vmem [resolvable:$true] %s18_s22 }
   0x3   :  { %p1619_p1 = scmp.lt.u32.totalorder %s1615_s25, %s2363_s0 }
   0x5   :  { %p1621_p2 = pnand %p1619_p1, %p1616_p0 }
   0x7   :  { %1624 = shalt.err (!%p1621_p2)
}
   0x8   :  { %s1625_s30 = scalar_lea.vmem %s19_s22, 3328  ;;  %p1630_p4 = scmp.lt.s32.totalorder %s19_s22, %s19_s22 }
   0x9   :  { %p1626_p3 = scmp.ne.s32.totalorder %s19_s22, %s1625_s30  ;;  %p1631_p5 = scmp.lt.s32.totalorder %s1625_s30, %s1625_s30 }
   0xb   :  { %p1632_p6 = por %p1631_p5, %p1630_p4 }
   0xd   :  { %p1633_p7 = pnand %p1632_p6, %p1626_p3 }
   0xf   :  { %1636 = shalt.err (!%p1633_p7)
}
  0x10   :  { %s1664_s7 = smov 256   ;;  %s1665_s8 = smov 16  }
  0x11   :  { %24 = dma.hbm_to_vmem [thread:$0]  %s2363_s0, 3328, %s19_s22, [#allocation3], %s1664_s7, %s1664_s7, %s1665_s8  }
  0x12   :  { %s1666_s11 = smov [#allocation4]   ;;  %s1637_s15 = scalar_lea.hbm %s2368_s5, 4096 }
  0x13   :  { %s38_s12 = sshll.u32 %s1666_s11, 4  ;;  %p1638_p8 = scmp.ne.s32.totalorder %s2368_s5, %s1637_s15  ;;  %s39_s12 = int_to_ptr.vmem [resolvable:$true] %s38_s12 }
  0x14   :  { %p1641_p9 = scmp.lt.u32.totalorder %s1637_s15, %s2368_s5 }
  0x16   :  { %p1643_p10 = pnand %p1641_p9, %p1638_p8 }
  0x18   :  { %1646 = shalt.err (!%p1643_p10)
}
  0x19   :  { %s1647_s20 = scalar_lea.vmem %s39_s12, 4096  ;;  %p1652_p12 = scmp.lt.s32.totalorder %s39_s12, %s39_s12 }
  0x1a   :  { %p1648_p11 = scmp.ne.s32.totalorder %s39_s12, %s1647_s20  ;;  %p1653_p13 = scmp.lt.s32.totalorder %s1647_s20, %s1647_s20 }
  0x1c   :  { %p1654_p0 = por %p1653_p13, %p1652_p12 }
  0x1e   :  { %p1655_p1 = pnand %p1654_p0, %p1648_p11 }
  0x20   :  { %1658 = shalt.err (!%p1655_p1)
}
  0x21   :  { %s1667_s0 = smov 128   ;;  %s1668_s21 = smov 8  }
  0x22   :  { %44 = dma.hbm_to_vmem [thread:$0]  %s2368_s5, 4096, %s39_s12, [#allocation5], %s1667_s0, %s1667_s0, %s1668_s21  }
  0x23   :  { %1659 = dma.done.wait [#allocation3], 3328  }
  0x24   :  { %1660 = vsyncadd [#allocation3], 4294963968 }
  0x25   :  { %1661 = dma.done.wait [#allocation5], 4096  }
  0x26   :  { %1662 = vsyncadd [#allocation5], 4294963200  ;;  %v165_v0 = vlaneseq  ;;  %v1731_v4 = vld [vmem:[#allocation2] sm:$0xff]  ;;  %v1733_v5 = vld [vmem:[#allocation2 + $0x8] sm:$0xff]  ;;  %vm207_vm0 = vcmask 1043456   ;;  %vm673_vm1 = vcmask 408576  }
  0x27   :  { %v98_v6 = vld [vmem:[%s2365_s2] sm:$0x3]  ;;  %v1743_v9 = vld [vmem:[#allocation2 + $0x10] sm:$0xff]  ;;  %v1745_v10 = vld [vmem:[#allocation2 + $0x18] sm:$0xff]  ;;  %vm686_vm2 = vcmask 404480   ;;  %vm750_vm3 = vcmask 1040384  }
  0x28   :  { %v166_v1 = vshrl.u32 %v165_v0, 7  ;;  %v1747_v11 = vld [vmem:[#allocation2 + $0x20] sm:$0xff]  ;;  %v1749_v12 = vld [vmem:[#allocation2 + $0x28] sm:$0xff]  ;;  %v1751_v13 = vld [vmem:[#allocation2 + $0x30] sm:$0xff]  ;;  %vm1062_vm4 = vcmask 1045504   ;;  %vm1198_vm5 = vcmask 1046528  }
  0x29   :  { %v1753_v14 = vld [vmem:[#allocation2 + $0x38] sm:$0xff]  ;;  %v1771_v23 = vld [vmem:[#allocation2 + $0x40] sm:$0xff]  ;;  %v1773_v24 = vld [vmem:[#allocation2 + $0x48] sm:$0xff] }
  0x2a   :  { %v1729_v2 = vsub.s32 0, %v166_v1  ;;  %v171_v3 = vsub.s32 1, %v166_v1  ;;  %v1775_v26 = vld [vmem:[#allocation2 + $0x50] sm:$0xff]  ;;  %v1777_v27 = vld [vmem:[#allocation2 + $0x58] sm:$0xff]  ;;  %v1783_v32 = vld [vmem:[#allocation2 + $0x60] sm:$0xff] }
  0x2b   :  { %v1785_v33 = vld [vmem:[#allocation2 + $0x68] sm:$0xff]  ;;  %v131_v34 = vld [vmem:[%s2367_s4] sm:$0x3]  ;;  %v80_v40 = vld [vmem:[%s2364_s1 + $0x10] sm:$0xff] }
  0x2c   :  { %v1739_v7 = vrot.slane %v98_v6, %v1729_v2  ;;  %v1741_v8 = vrot.slane %v98_v6, %v171_v3  ;;  %v78_v38 = vld [vmem:[%s2364_s1] sm:$0xff]  ;;  %v79_v39 = vld [vmem:[%s2364_s1 + $0x8] sm:$0xff]  ;;  %v81_v41 = vld [vmem:[%s2364_s1 + $0x18] sm:$0xff]  ;;  %v1807_v42 = vrot.slane %v131_v34, %v1729_v2  ;;  %v1809_v43 = vrot.slane %v131_v34, %v171_v3 }
  0x2d   :  { %v82_v47 = vld [vmem:[%s2364_s1 + $0x20] sm:$0xff]  ;;  %v83_v48 = vld [vmem:[%s2364_s1 + $0x28] sm:$0xff]  ;;  %v84_v54 = vld [vmem:[%s2364_s1 + $0x30] sm:$0xff] }
  0x2e   :  { %v251_v15 = vmul.f32 %v1739_v7, %v1731_v4  ;;  %v252_v16 = vmul.f32 %v1741_v8, %v1733_v5  ;;  %v253_v17 = vmul.f32 %v1739_v7, %v1743_v9  ;;  %v254_v18 = vmul.f32 %v1741_v8, %v1745_v10  ;;  %v86_v52 = vld [vmem:[%s2364_s1 + $0x40] sm:$0xf]  ;;  %v87_v53 = vld [vmem:[%s2364_s1 + $0x48] sm:$0xf]  ;;  %v85_v55 = vld [vmem:[%s2364_s1 + $0x38] sm:$0xff] }
  0x2f   :  { %v255_v19 = vmul.f32 %v1739_v7, %v1747_v11  ;;  %v256_v20 = vmul.f32 %v1741_v8, %v1749_v12  ;;  %v257_v21 = vmul.f32 %v1739_v7, %v1751_v13  ;;  %v258_v22 = vmul.f32 %v1741_v8, %v1753_v14  ;;  %v1483_v34 = vld [vmem:[%s2366_s3 + $0x40] ss:$8 sps:$4 sm:$0xff]  }
  0x30   :  { %v277_v25 = vadd.f32 %v252_v16, %v251_v15  ;;  %v280_v29 = vadd.f32 %v254_v18, %v253_v17  ;;  %v259_v30 = vmul.f32 %v1739_v7, %v1771_v23  ;;  %v260_v31 = vmul.f32 %v1741_v8, %v1773_v24 }
  0x31   :  { %v283_v28 = vadd.f32 %v256_v20, %v255_v19  ;;  %v286_v35 = vadd.f32 %v258_v22, %v257_v21  ;;  %v261_v36 = vmul.f32 %v1739_v7, %v1775_v26  ;;  %v262_v37 = vmul.f32 %v1741_v8, %v1777_v27  ;;  %v1469_v19 = vld [vmem:[%s2366_s3 + $0x4] ss:$8 sps:$4 sm:$0xff]   ;;  %v1471_v20 = vld [vmem:[%s2366_s3] ss:$8 sps:$4 sm:$0xff]   ;;  %v1472_v21 = vld [vmem:[%s2366_s3 + $0x14] ss:$8 sps:$4 sm:$0xff]  }
  0x32   :  { %278 = vadd.xlane.f32.xlu0 %v277_v25  ;;  %v289_v44 = vadd.f32 %v260_v31, %v259_v30  ;;  %v263_v45 = vmul.f32 %v1739_v7, %v1783_v32  ;;  %v264_v46 = vmul.f32 %v1741_v8, %v1785_v33  ;;  %v175_v50 = vmul.f32 %v1807_v42, %v78_v38  ;;  %v1474_v22 = vld [vmem:[%s2366_s3 + $0x10] ss:$8 sps:$4 sm:$0xff]   ;;  %v1475_v25 = vld [vmem:[%s2366_s3 + $0x24] ss:$8 sps:$4 sm:$0xff]  }
  0x33   :  { %284 = vadd.xlane.f32.xlu1 %v283_v28  ;;  %v292_v49 = vadd.f32 %v262_v37, %v261_v36  ;;  %v176_v51 = vmul.f32 %v1809_v43, %v79_v39  ;;  %v177_v57 = vmul.f32 %v1807_v42, %v80_v40  ;;  %v178_v58 = vmul.f32 %v1809_v43, %v81_v41  ;;  %v1477_v28 = vld [vmem:[%s2366_s3 + $0x20] ss:$8 sps:$4 sm:$0xff]   ;;  %v1480_v30 = vld [vmem:[%s2366_s3 + $0x30] ss:$8 sps:$4 sm:$0xff]   ;;  %v1481_v31 = vld [vmem:[%s2366_s3 + $0x44] ss:$8 sps:$4 sm:$0xff]  }
  0x34   :  { %v295_v56 = vadd.f32 %v264_v46, %v263_v45  ;;  %v179_v60 = vmul.f32 %v1807_v42, %v82_v47  ;;  %v180_v61 = vmul.f32 %v1809_v43, %v83_v48  ;;  %v183_v62 = vmul.f32 %v1807_v42, %v86_v52  ;;  %505 = vmatprep.subr.bf16.mxu0 %v1469_v19  ;;  %v1486_v36 = vld [vmem:[%s2366_s3 + $0x50] ss:$8 sps:$4 sm:$0xff]   ;;  %v1487_v37 = vld [vmem:[%s2366_s3 + $0x64] ss:$8 sps:$4 sm:$0xff]   ;;  %v1489_v41 = vld [vmem:[%s2366_s3 + $0x60] ss:$8 sps:$4 sm:$0xff]  }
  0x35   :  { %v195_v59 = vadd.f32 %v176_v51, %v175_v50  ;;  %v184_v63 = vmul.f32 %v1809_v43, %v87_v53  ;;  %v198_v0 = vadd.f32 %v178_v58, %v177_v57  ;;  %v181_v1 = vmul.f32 %v1807_v42, %v84_v54  ;;  %506 = vmatpush1.bf16.xpose.msra.mxu0 %v1471_v20  ;;  %v1490_v48 = vld [vmem:[%s2366_s3 + $0x74] ss:$8 sps:$4 sm:$0xff]   ;;  %v1493_v54 = vld [vmem:[%s2366_s3 + $0x84] ss:$8 sps:$4 sm:$0xff]  }
  0x36   :  { %281 = vadd.xlane.f32.xlu0 %v280_v29  ;;  %v182_v3 = vmul.f32 %v1809_v43, %v85_v55  ;;  %v201_v6 = vadd.f32 %v180_v61, %v179_v60  ;;  %v208_v15 = vsel %vm207_vm0, %v183_v62, 0.0  ;;  %507 = vmatprep.subr.bf16.mxu0 %v1472_v21  ;;  %v1478_v29 = vld [vmem:[%s2366_s3 + $0x34] ss:$8 sps:$4 sm:$0xff]   ;;  %v1495_v55 = vld [vmem:[%s2366_s3 + $0x80] ss:$8 sps:$4 sm:$0xff]   ;;  %v332_v62 = vpack.c.bf16 %v1745_v10, %v1733_v5 }
  0x37   :  { %287 = vadd.xlane.f32.xlu1 %v286_v35  ;;  %v209_v16 = vsel %vm207_vm0, %v184_v63, 0.0  ;;  %v1484_v35 = vld [vmem:[%s2366_s3 + $0x54] ss:$8 sps:$4 sm:$0xff]   ;;  %v1498_v60 = vld [vmem:[%s2366_s3 + $0x90] ss:$8 sps:$4 sm:$0xff]   ;;  %v331_v19 = vpack.c.bf16 %v1743_v9, %v1731_v4  ;;  %v334_v20 = vpack.c.bf16 %v1753_v14, %v1749_v12  ;;  %v333_v21 = vpack.c.bf16 %v1751_v13, %v1747_v11 }
  0x38   :  { %v204_v17 = vadd.f32 %v182_v3, %v181_v1  ;;  %v210_v18 = vadd.f32 %v209_v16, %v208_v15  ;;  %v1499_v61 = vld [vmem:[%s2366_s3 + $0xa4] ss:$8 sps:$4 sm:$0xff]   ;;  %537 = vmatprep.mubr.bf16.mxu0 %v332_v62  ;;  %v1501_v63 = vld [vmem:[%s2366_s3 + $0xa0] ss:$8 sps:$4 sm:$0xff]   ;;  %v1504_v1 = vld [vmem:[%s2366_s3 + $0xb0] ss:$8 sps:$4 sm:$0xff]  }
  0x39   :  { %v1505_v5 = vld [vmem:[%s2366_s3 + $0xc4] ss:$8 sps:$4 sm:$0xff]   ;;  %v1507_v10 = vld [vmem:[%s2366_s3 + $0xc0] ss:$8 sps:$4 sm:$0xff]   ;;  %v1508_v3 = vld [vmem:[%s2366_s3 + $0xd4] ss:$8 sps:$4 sm:$0xff]  }
  0x3a   :  { %290 = vadd.xlane.f32.xlu0 %v289_v44  ;;  %v1511_v15 = vld [vmem:[%s2366_s3 + $0xe4] ss:$8 sps:$4 sm:$0xff]   ;;  %v1513_v16 = vld [vmem:[%s2366_s3 + $0xe0] ss:$8 sps:$4 sm:$0xff]   ;;  %v66_v4 = vld [vmem:[#allocation2 + $0x70] sm:$0xff] }
  0x3b   :  { %293 = vadd.xlane.f32.xlu1 %v292_v49  ;;  %v1492_v49 = vld [vmem:[%s2366_s3 + $0x70] ss:$8 sps:$4 sm:$0xff]   ;;  %v337_v9 = vpack.c.bf16 %v66_v4, %v1783_v32 }
  0x3d   :  { %508 = vmatpush1.bf16.xpose.msra.mxu0 %v1474_v22  ;;  %v336_v22 = vpack.c.bf16 %v1777_v27, %v1773_v24 }
  0x3e   :  { %296 = vadd.xlane.f32.xlu0 %v295_v56  ;;  %509 = vmatprep.subr.bf16.mxu0 %v1475_v25  ;;  %v67_v25 = vld [vmem:[#allocation2 + $0x78] sm:$0xff] }
  0x3f   :  { %196 = vadd.xlane.f32.xlu1 %v195_v59  ;;  %v1496_v59 = vld [vmem:[%s2366_s3 + $0x94] ss:$8 sps:$4 sm:$0xff]  }
  0x42   :  { %199 = vadd.xlane.f32.xlu0 %v198_v0  ;;  %v1502_v0 = vld [vmem:[%s2366_s3 + $0xb4] ss:$8 sps:$4 sm:$0xff]  }
  0x43   :  { %202 = vadd.xlane.f32.xlu1 %v201_v6  ;;  %v1510_v6 = vld [vmem:[%s2366_s3 + $0xd0] ss:$8 sps:$4 sm:$0xff]  }
  0x45   :  { %510 = vmatpush1.bf16.xpose.msra.mxu0 %v1477_v28  ;;  %v335_v28 = vpack.c.bf16 %v1775_v26, %v1771_v23 }
  0x46   :  { %205 = vadd.xlane.f32.xlu0 %v204_v17  ;;  %511 = vmatprep.subr.bf16.mxu0 %v1478_v29  ;;  %v1514_v17 = vld [vmem:[%s2366_s3 + $0xf4] ss:$8 sps:$4 sm:$0xff]   ;;  %v338_v29 = vpack.c.bf16 %v67_v25, %v1785_v33 }
  0x47   :  { %211 = vadd.xlane.f32.xlu1 %v210_v18  ;;  %v1516_v18 = vld [vmem:[%s2366_s3 + $0xf0] ss:$8 sps:$4 sm:$0xff]  }
  0x4d   :  { %512 = vmatpush1.bf16.xpose.msra.mxu0 %v1480_v30 }
  0x4e   :  { %513 = vmatprep.subr.bf16.mxu0 %v1481_v31 }
  0x55   :  { %514 = vmatpush1.bf16.xpose.msra.mxu0 %v1483_v34 }
  0x56   :  { %515 = vmatprep.subr.bf16.mxu0 %v1484_v35 }
  0x5d   :  { %516 = vmatpush1.bf16.xpose.msra.mxu0 %v1486_v36 }
  0x5e   :  { %517 = vmatprep.subr.bf16.mxu0 %v1487_v37 }
  0x65   :  { %518 = vmatpush1.bf16.xpose.msra.mxu0 %v1489_v41 }
  0x66   :  { %519 = vmatprep.subr.bf16.mxu0 %v1490_v48  ;;  %v69_v48 = vld [vmem:[#allocation2 + $0x88] sm:$0xff] }
  0x6d   :  { %520 = vmatpush1.bf16.xpose.msra.mxu0 %v1492_v49 }
  0x6e   :  { %521 = vmatprep.subr.bf16.mxu0 %v1493_v54  ;;  %v71_v54 = vld [vmem:[#allocation2 + $0x98] sm:$0xff] }
  0x75   :  { %522 = vmatpush1.bf16.xpose.msra.mxu0 %v1495_v55 }
  0x76   :  { %523 = vmatprep.subr.bf16.mxu0 %v1496_v59  ;;  %v270_v59 = vmul.f32 %v1741_v8, %v71_v54 }
  0x7d   :  { %524 = vmatpush1.bf16.xpose.msra.mxu0 %v1498_v60 }
  0x7e   :  { %525 = vmatprep.subr.bf16.mxu0 %v1499_v61  ;;  %v340_v61 = vpack.c.bf16 %v71_v54, %v69_v48 }
  0x85   :  { %526 = vmatpush1.bf16.xpose.msra.mxu0 %v1501_v63 }
  0x86   :  { %527 = vmatprep.subr.bf16.mxu0 %v1502_v0 }
  0x8d   :  { %528 = vmatpush1.bf16.xpose.msra.mxu0 %v1504_v1 }
  0x8e   :  { %529 = vmatprep.subr.bf16.mxu0 %v1505_v5 }
  0x95   :  { %530 = vmatpush1.bf16.xpose.msra.mxu0 %v1507_v10 }
  0x96   :  { %531 = vmatprep.subr.bf16.mxu0 %v1508_v3 }
  0x9d   :  { %532 = vmatpush1.bf16.xpose.msra.mxu0 %v1510_v6 }
  0x9e   :  { %533 = vmatprep.subr.bf16.mxu0 %v1511_v15 }
  0xa5   :  { %534 = vmatpush1.bf16.xpose.msra.mxu0 %v1513_v16 }
  0xa6   :  { %535 = vmatprep.subr.bf16.mxu0 %v1514_v17 }
  0xad   :  { %536 = vmatpush1.bf16.xpose.msra.mxu0 %v1516_v18 }
  0xb4   :  { %538 = vmatmul.mubr.bf16.vlgmr.msra.gmra.mrb[0].mxu0 %v331_v19 }
  0xb5   :  { %547 = vmatprep.mubr.bf16.mxu0 %v334_v20 }
  0xbc   :  { %548 = vmatmul.mubr.bf16.gmra.mrb[4].mxu0 %v333_v21 }
  0xbd   :  { %557 = vmatprep.mubr.bf16.mxu0 %v336_v22 }
  0xbf   :  { %v279_v38 = vpop.xlane.xlu0 %278 }
  0xc0   :  { %v318_v39 = vmax.f32 %v279_v38, 0.0  ;;  %v285_v40 = vpop.xlane.xlu1 %284 }
  0xc1   :  { %v320_v46 = vmax.f32 %v285_v40, 0.0 }
  0xc2   :  { %632 = vxpose.xlu0.b32.start [1/7] (short) (narrow) %v318_v39, 8 }
  0xc3   :  { %v282_v44 = vpop.xlane.xlu0 %281 }
  0xc4   :  { %v319_v45 = vmax.f32 %v282_v44, 0.0  ;;  %v288_v47 = vpop.xlane.xlu1 %287  ;;  %558 = vmatmul.mubr.bf16.gmra.mrb[8].mxu0 %v335_v28 }
  0xc5   :  { %v321_v50 = vmax.f32 %v288_v47, 0.0  ;;  %567 = vmatprep.mubr.bf16.mxu0 %v338_v29  ;;  %v1967_v47 = vld [vmem:[#allocation2 + $0x80] sm:$0xff] }
  0xc6   :  { %633 = vxpose.xlu0.b32.cont [2/7] (short) (narrow) %v319_v45, 8  ;;  %v265_v45 = vmul.f32 %v1739_v7, %v66_v4 }
  0xc7   :  { %v291_v51 = vpop.xlane.xlu0 %290 }
  0xc8   :  { %v322_v52 = vmax.f32 %v291_v51, 0.0  ;;  %v294_v53 = vpop.xlane.xlu1 %293  ;;  %v267_v51 = vmul.f32 %v1739_v7, %v1967_v47 }
  0xc9   :  { %v323_v56 = vmax.f32 %v294_v53, 0.0  ;;  %v1973_v53 = vld [vmem:[#allocation2 + $0x90] sm:$0xff] }
  0xca   :  { %634 = vxpose.xlu0.b32.cont [3/7] (short) (narrow) %v320_v46, 8  ;;  %v266_v46 = vmul.f32 %v1741_v8, %v67_v25 }
  0xcb   :  { %v1899_v57 = vpop.xlane.xlu0 %296 }
  0xcc   :  { %v324_v58 = vmax.f32 %v1899_v57, 0.0  ;;  %568 = vmatmul.mubr.bf16.gmra.mrb[12].mxu0 %v337_v9  ;;  %v197_v11 = vpop.xlane.xlu1 %196 }
  0xcd   :  { %v230_v13 = vmax.f32 %v197_v11, 0.0  ;;  %577 = vmatprep.mubr.bf16.mxu0 %v340_v61  ;;  %v1986_v11 = vld [vmem:[#allocation2 + $0xa0] sm:$0xff] }
  0xce   :  { %635 = vxpose.xlu0.b32.cont [4/7] (short) (narrow) %v321_v50, 8  ;;  %v298_v50 = vadd.f32 %v266_v46, %v265_v45  ;;  %v339_v46 = vpack.c.bf16 %v1973_v53, %v1967_v47 }
  0xcf   :  { %v200_v12 = vpop.xlane.xlu0 %199 }
  0xd0   :  { %v231_v27 = vmax.f32 %v200_v12, 0.0  ;;  %v203_v34 = vpop.xlane.xlu1 %202 }
  0xd1   :  { %v232_v23 = vmax.f32 %v203_v34, 0.0 }
  0xd2   :  { %636 = vxpose.xlu0.b32.cont [5/7] (short) (narrow) %v322_v52, 8  ;;  %v268_v52 = vmul.f32 %v1741_v8, %v69_v48 }
  0xd3   :  { %v206_v14 = vpop.xlane.xlu0 %205 }
  0xd4   :  { %v212_v36 = vpop.xlane.xlu1 %211  ;;  %v233_v37 = vmax.f32 %v206_v14, 0.0  ;;  %v301_v55 = vadd.f32 %v268_v52, %v267_v51  ;;  %578 = vmatmul.mubr.bf16.gmra.mrb[16].mxu0 %v339_v46 }
  0xd5   :  { %v234_v38 = vmax.f32 %v212_v36, 0.0 }
  0xd6   :  { %637 = vxpose.xlu0.b32.cont [6/7] (short) (narrow) %v323_v56, 8  ;;  %v269_v56 = vmul.f32 %v1739_v7, %v1973_v53 }
  0xd8   :  { %v304_v60 = vadd.f32 %v270_v59, %v269_v56 }
  0xda   :  { %638 = vxpose.xlu0.b32.end [7/7] (short) (narrow) %v324_v58, 8 }
 0x142   :  { %v648_v30 = vpop.trf.xlu0 }
 0x143   :  { %v667_v24 = vrot.slane %v648_v30, %v1729_v2 }
 0x145   :  { %v668_v31 = vmul.f32 %v667_v24, %v230_v13  ;;  %v669_v33 = vmul.f32 %v667_v24, %v231_v27  ;;  %v670_v32 = vmul.f32 %v667_v24, %v232_v23  ;;  %v671_v40 = vmul.f32 %v667_v24, %v233_v37  ;;  %v1988_v13 = vld [vmem:[#allocation2 + $0xa8] sm:$0xff] }
 0x146   :  { %v672_v44 = vmul.f32 %v667_v24, %v234_v38  ;;  %v272_v34 = vmul.f32 %v1741_v8, %v1988_v13 }
 0x147   :  { %v674_v26 = vsel %vm673_vm1, %v668_v31, -inf  ;;  %v677_v35 = vsel %vm673_vm1, %v669_v33, -inf  ;;  %v680_v39 = vsel %vm673_vm1, %v670_v32, -inf  ;;  %v683_v41 = vsel %vm673_vm1, %v671_v40, -inf }
 0x148   :  { %675 = vmax.xlane.f32.xlu1 %v674_v26  ;;  %v687_v49 = vsel %vm686_vm2, %v672_v44, -inf }
 0x14c   :  { %678 = vmax.xlane.f32.xlu1 %v677_v35  ;;  %v2003_v35 = vld [vmem:[%s2364_s1 + $0x70] sm:$0xff] }
 0x14d   :  { %v189_v37 = vmul.f32 %v1807_v42, %v2003_v35 }
 0x150   :  { %681 = vmax.xlane.f32.xlu1 %v680_v39 }
 0x154   :  { %684 = vmax.xlane.f32.xlu1 %v683_v41  ;;  %v2018_v41 = vld [vmem:[#allocation2 + $0xb8] sm:$0xff] }
 0x155   :  { %v274_v47 = vmul.f32 %v1741_v8, %v2018_v41 }
 0x158   :  { %688 = vmax.xlane.f32.xlu1 %v687_v49  ;;  %v2022_v49 = vld [vmem:[#allocation2 + $0xc0] sm:$0xf] }
 0x15c   :  { %299 = vadd.xlane.f32.xlu1 %v298_v50  ;;  %v2024_v50 = vld [vmem:[#allocation2 + $0xc8] sm:$0xf] }
 0x160   :  { %302 = vadd.xlane.f32.xlu1 %v301_v55 }
 0x164   :  { %305 = vadd.xlane.f32.xlu1 %v304_v60 }
 0x187   :  { %v539_v22 = vpop.f32.mrb[0].mxu0 }
 0x188   :  { %v541_v28 = vpop.f32.mrb[1].mxu0 }
 0x189   :  { %v543_v29 = vpop.f32.mrb[2].mxu0  ;;  %v607_v26 = vmax.f32 %v541_v28, 0.0  ;;  %v2048_v28 = vld [vmem:[%s2364_s1 + $0x58] sm:$0xff] }
 0x18a   :  { %v545_v12 = vpop.f32.mrb[3].mxu0  ;;  %v608_v45 = vmax.f32 %v543_v29, 0.0 }
 0x18f   :  { %v549_v27 = vpop.f32.mrb[4].mxu0 }
 0x190   :  { %v610_v51 = vmax.f32 %v549_v27, 0.0  ;;  %v551_v52 = vpop.f32.mrb[5].mxu0 }
 0x191   :  { %v611_v55 = vmax.f32 %v551_v52, 0.0  ;;  %v553_v56 = vpop.f32.mrb[6].mxu0  ;;  %v2090_v52 = vld [vmem:[%s2364_s1 + $0x90] sm:$0xf] }
 0x192   :  { %v612_v53 = vmax.f32 %v553_v56, 0.0  ;;  %v555_v61 = vpop.f32.mrb[7].mxu0 }
 0x1d5   :  { %v676_v62 = vpop.xlane.xlu1 %675 }
 0x1d6   :  { %v690_v63 = vsub.f32 %v668_v31, %v676_v62  ;;  %v271_v31 = vmul.f32 %v1739_v7, %v1986_v11  ;;  %v275_v62 = vmul.f32 %v1739_v7, %v2022_v49 }
 0x1d8   :  { %v695_v0 = vmul.f32 1.442695, %v690_v63  ;;  %v307_v39 = vadd.f32 %v272_v34, %v271_v31  ;;  %v276_v63 = vmul.f32 %v1741_v8, %v2024_v50  ;;  %v186_v31 = vmul.f32 %v1809_v43, %v2048_v28 }
 0x1d9   :  { %v679_v1 = vpop.xlane.xlu1 %678 }
 0x1da   :  { %1565 = vpow2.f32 %v695_v0  ;;  %v691_v5 = vsub.f32 %v669_v33, %v679_v1  ;;  %v609_v33 = vmax.f32 %v545_v12, 0.0  ;;  %v613_v0 = vmax.f32 %v555_v61, 0.0  ;;  %v559_v1 = vpop.f32.mrb[8].mxu0 }
 0x1db   :  { %v314_v8 = vsel %vm207_vm0, %v276_v63, 0.0 }
 0x1dc   :  { %v697_v10 = vmul.f32 1.442695, %v691_v5  ;;  %v734_v54 = vpack.c.bf16 %v609_v33, %v607_v26  ;;  %v2059_v33 = vld [vmem:[%s2364_s1 + $0x60] sm:$0xff] }
 0x1dd   :  { %v682_v3 = vpop.xlane.xlu1 %681 }
 0x1de   :  { %1567 = vpow2.f32 %v697_v10  ;;  %v692_v6 = vsub.f32 %v670_v32, %v682_v3  ;;  %v2008_v32 = vld [vmem:[%s2364_s1 + $0x78] sm:$0xff]  ;;  %757 = vmatprep.subr.bf16.mxu1 %v734_v54  ;;  %v735_v10 = vpack.c.bf16 %v612_v53, %v610_v51  ;;  %v614_v3 = vmax.f32 %v559_v1, 0.0  ;;  %v2084_v51 = vld [vmem:[%s2364_s1 + $0x88] sm:$0xff] }
 0x1df   :  { %v190_v38 = vmul.f32 %v1809_v43, %v2008_v32  ;;  %v2095_v54 = vld [vmem:[%s2364_s1 + $0x98] sm:$0xf]  ;;  %v193_v53 = vmul.f32 %v1807_v42, %v2090_v52 }
 0x1e0   :  { %v699_v15 = vmul.f32 1.442695, %v692_v6  ;;  %v561_v6 = vpop.f32.mrb[9].mxu0  ;;  %v194_v61 = vmul.f32 %v1809_v43, %v2095_v54 }
 0x1e1   :  { %v685_v16 = vpop.xlane.xlu1 %684  ;;  %v219_v48 = vadd.f32 %v190_v38, %v189_v37 }
 0x1e2   :  { %1569 = vpow2.f32 %v699_v15  ;;  %v693_v17 = vsub.f32 %v671_v40, %v685_v16  ;;  %v2016_v40 = vld [vmem:[#allocation2 + $0xb0] sm:$0xff]  ;;  %v736_v16 = vpack.c.bf16 %v613_v0, %v611_v55  ;;  %v225_v0 = vsel %vm207_vm0, %v193_v53, 0.0 }
 0x1e3   :  { %220 = vadd.xlane.f32.xlu0 %v219_v48  ;;  %v273_v60 = vmul.f32 %v1739_v7, %v2016_v40  ;;  %v2079_v48 = vld [vmem:[%s2364_s1 + $0x80] sm:$0xff]  ;;  %v226_v1 = vsel %vm207_vm0, %v194_v61, 0.0 }
 0x1e4   :  { %v1978_v18 = vpop.eup %1565  ;;  %v701_v19 = vmul.f32 1.442695, %v693_v17  ;;  %v615_v17 = vmax.f32 %v561_v6, 0.0  ;;  %v2114_v6 = vld [vmem:[#allocation4 + $0x24] ss:$8 sps:$4 sm:$0xff]  }
 0x1e5   :  { %v689_v20 = vpop.xlane.xlu1 %688  ;;  %v705_v21 = vsel %vm673_vm1, %v1978_v18, 0.0 }
 0x1e6   :  { %1571 = vpow2.f32 %v701_v19  ;;  %v694_v25 = vsub.f32 %v672_v44, %v689_v20  ;;  %706 = vadd.xlane.f32.xlu1 %v705_v21  ;;  %v606_v44 = vmax.f32 %v539_v22, 0.0  ;;  %v563_v19 = vpop.f32.mrb[10].mxu0  ;;  %v310_v20 = vadd.f32 %v274_v47, %v273_v60 }
 0x1e7   :  { %v616_v21 = vmax.f32 %v563_v19, 0.0  ;;  %v565_v7 = vpop.f32.mrb[11].mxu0  ;;  %v313_v22 = vsel %vm207_vm0, %v275_v62, 0.0  ;;  %v191_v60 = vmul.f32 %v1807_v42, %v2079_v48  ;;  %v192_v47 = vmul.f32 %v1809_v43, %v2084_v51  ;;  %v2124_v19 = vld [vmem:[#allocation4 + $0x30] ss:$8 sps:$4 sm:$0xff]  }
 0x1e8   :  { %v1982_v4 = vpop.eup %1567  ;;  %v703_v9 = vmul.f32 1.442695, %v694_v25  ;;  %v733_v5 = vpack.c.bf16 %v608_v45, %v606_v44  ;;  %v2043_v25 = vld [vmem:[%s2364_s1 + $0x50] sm:$0xff]  ;;  %v617_v29 = vmax.f32 %v565_v7, 0.0  ;;  %v187_v45 = vmul.f32 %v1807_v42, %v2059_v33 }
 0x1e9   :  { %v708_v14 = vsel %vm673_vm1, %v1982_v4, 0.0  ;;  %v185_v27 = vmul.f32 %v1807_v42, %v2043_v25  ;;  %v1669_v62 = vmov 0   ;;  %v222_v63 = vadd.f32 %v192_v47, %v191_v60  ;;  %v1522_v42 = vld [vmem:[#allocation4 + $0x14] ss:$8 sps:$4 sm:$0xff]  }
 0x1ea   :  { %709 = vadd.xlane.f32.xlu1 %v708_v14  ;;  %1573 = vpow2.f32 %v703_v9  ;;  %758 = vmatpush1.bf16.msra.mxu1 %v733_v5  ;;  %v737_v9 = vpack.c.bf16 %v616_v21, %v614_v3  ;;  %v738_v12 = vpack.c.bf16 %v617_v29, %v615_v17  ;;  %v569_v14 = vpop.f32.mrb[12].mxu0  ;;  %v227_v5 = vadd.f32 %v226_v1, %v225_v0  ;;  %v2109_v3 = vld [vmem:[#allocation4] ss:$8 sps:$4 sm:$0xff]   ;;  %v300_v17 = vpop.xlane.xlu1 %299  ;;  %v2132_v29 = vld [vmem:[#allocation4 + $0x54] ss:$8 sps:$4 sm:$0xff]  }
 0x1eb   :  { %759 = vmatprep.subr.bf16.mxu1 %v736_v16  ;;  %v2054_v34 = vmax.f32 %v569_v14, 0.0  ;;  %v571_v26 = vpop.f32.mrb[13].mxu0  ;;  %v213_v44 = vadd.f32 %v186_v31, %v185_v27  ;;  %789 = vmatprep.mubr.bf16.mxu1 %v1669_v62  ;;  %v2120_v16 = vld [vmem:[#allocation4 + $0x34] ss:$8 sps:$4 sm:$0xff]   ;;  %v325_v7 = vmax.f32 %v300_v17, 0.0  ;;  %v1063_v14 = vrot.slane %v324_v58, 2 }
 0x1ec   :  { %v1990_v30 = vpop.eup %1569  ;;  %v2066_v37 = vmax.f32 %v571_v26, 0.0  ;;  %v2139_v26 = vld [vmem:[#allocation4 + $0x50] ss:$8 sps:$4 sm:$0xff]   ;;  %v2150_v17 = vld [vmem:[#allocation4 + $0x64] ss:$8 sps:$4 sm:$0xff]  }
 0x1ed   :  { %v711_v24 = vsel %vm673_vm1, %v1990_v30, 0.0  ;;  %v739_v38 = vpack.c.bf16 %v2054_v34, %v2054_v34 }
 0x1ee   :  { %712 = vadd.xlane.f32.xlu1 %v711_v24  ;;  %760 = vmatpush1.bf16.msra.mxu1 %v735_v10  ;;  %v315_v24 = vadd.f32 %v314_v8, %v313_v22  ;;  %v1519_v10 = vld [vmem:[#allocation4 + $0x4] ss:$8 sps:$4 sm:$0xff]   ;;  %v303_v21 = vpop.xlane.xlu1 %302  ;;  %v2130_v22 = vld [vmem:[#allocation4 + $0x40] ss:$8 sps:$4 sm:$0xff]  }
 0x1ef   :  { %761 = vmatprep.subr.bf16.mxu1 %v738_v12  ;;  %v752_v55 = vsel %vm750_vm3, %v739_v38, 0  ;;  %1301 = vmatprep.subr.bf16.mxu0 %v1519_v10  ;;  %v326_v8 = vmax.f32 %v303_v21, 0.0  ;;  %v1064_v12 = vrot.slane %v325_v7, 2 }
 0x1f0   :  { %v1998_v23 = vpop.eup %1571  ;;  %1302 = vmatpush1.bf16.xpose.msra.mxu0 %v2109_v3 }
 0x1f1   :  { %v714_v36 = vsel %vm673_vm1, %v1998_v23, 0.0  ;;  %1303 = vmatprep.subr.bf16.mxu0 %v1522_v42  ;;  %v1065_v31 = vsel %vm1062_vm4, %v1063_v14, %v1064_v12 }
 0x1f2   :  { %715 = vadd.xlane.f32.xlu1 %v714_v36  ;;  %v2064_v36 = vld [vmem:[%s2364_s1 + $0x68] sm:$0xff]  ;;  %762 = vmatpush1.bf16.msra.mxu1 %v737_v9  ;;  %v306_v9 = vpop.xlane.xlu1 %305 }
 0x1f3   :  { %v188_v46 = vmul.f32 %v1809_v43, %v2064_v36  ;;  %v2112_v43 = vld [vmem:[#allocation4 + $0x10] ss:$8 sps:$4 sm:$0xff]   ;;  %v327_v27 = vmax.f32 %v306_v9, 0.0 }
 0x1f4   :  { %v2026_v59 = vpop.eup %1573 }
 0x1f5   :  { %v717_v15 = vsel %vm686_vm2, %v2026_v59, 0.0  ;;  %v216_v56 = vadd.f32 %v188_v46, %v187_v45  ;;  %v1068_v38 = vrot.slane %v327_v27, 2  ;;  %v1540_v27 = vld [vmem:[#allocation4 + $0x74] ss:$8 sps:$4 sm:$0xff]  }
 0x1f6   :  { %308 = vadd.xlane.f32.xlu1 %v307_v39  ;;  %v740_v39 = vpack.c.bf16 %v2066_v37, %v2066_v37 }
 0x1f8   :  { %1411 = vmatprep.subr.msk.bf16.mxu1 %vm750_vm3, %v740_v39  ;;  %1304 = vmatpush1.bf16.xpose.msra.mxu0 %v2112_v43 }
 0x1f9   :  { %764 = vmatpush1.bf16.msra.mxu1 %v752_v55  ;;  %1305 = vmatprep.subr.bf16.mxu0 %v2114_v6 }
 0x1fa   :  { %718 = vadd.xlane.f32.xlu1 %v717_v15  ;;  %984 = vmatprep.subr.bf16.mxu1 %v1519_v10  ;;  %v2118_v15 = vld [vmem:[#allocation4 + $0x20] ss:$8 sps:$4 sm:$0xff]  }
 0x1fe   :  { %311 = vadd.xlane.f32.xlu1 %v310_v20  ;;  %v2126_v20 = vld [vmem:[#allocation4 + $0x44] ss:$8 sps:$4 sm:$0xff]  }
 0x200   :  { %1306 = vmatpush1.bf16.xpose.msra.mxu0 %v2118_v15 }
 0x201   :  { %1307 = vmatprep.subr.bf16.mxu0 %v2120_v16 }
 0x202   :  { %316 = vadd.xlane.f32.xlu1 %v315_v24  ;;  %v1066_v24 = vrot.slane %v326_v8, 2 }
 0x204   :  { %v1067_v39 = vsel %vm1062_vm4, %v1064_v12, %v1066_v24 }
 0x206   :  { %214 = vadd.xlane.f32.xlu1 %v213_v44  ;;  %v1069_v44 = vsel %vm1062_vm4, %v1066_v24, %v1068_v38 }
 0x208   :  { %1308 = vmatpush1.bf16.xpose.msra.mxu0 %v2124_v19 }
 0x209   :  { %1309 = vmatprep.subr.bf16.mxu0 %v2126_v20 }
 0x20a   :  { %217 = vadd.xlane.f32.xlu1 %v216_v56 }
 0x20e   :  { %223 = vadd.xlane.f32.xlu1 %v222_v63 }
 0x210   :  { %1310 = vmatpush1.bf16.xpose.msra.mxu0 %v2130_v22 }
 0x211   :  { %1311 = vmatprep.subr.bf16.mxu0 %v2132_v29 }
 0x212   :  { %228 = vadd.xlane.f32.xlu1 %v227_v5 }
 0x218   :  { %1312 = vmatpush1.bf16.xpose.msra.mxu0 %v2139_v26 }
 0x219   :  { %1313 = vmatprep.subr.bf16.mxu0 %v2150_v17 }
 0x245   :  { %1083 = vxpose.xlu1.b32.start [1/7] (short) (narrow) %v1065_v31, 8 }
 0x249   :  { %1084 = vxpose.xlu1.b32.cont [2/7] (short) (narrow) %v1067_v39, 8 }
 0x24d   :  { %1085 = vxpose.xlu1.b32.cont [3/7] (short) (narrow) %v1069_v44, 8 }
 0x273   :  { %v707_v45 = vpop.xlane.xlu1 %706 }
 0x274   :  { %1575 = vrcp.f32 %v707_v45  ;;  %v341_v45 = vpack.c.bf16 %v2016_v40, %v1986_v11  ;;  %v343_v11 = vpack.c.bf16 %v2022_v49, %v2022_v49  ;;  %v1549_v40 = vld [vmem:[#allocation4 + $0xa4] ss:$8 sps:$4 sm:$0xff]   ;;  %v1550_v49 = vld [vmem:[#allocation4 + $0xb0] ss:$8 sps:$4 sm:$0xff]  }
 0x277   :  { %v710_v57 = vpop.xlane.xlu1 %709 }
 0x278   :  { %1577 = vrcp.f32 %v710_v57  ;;  %v573_v57 = vpop.f32.mrb[14].mxu0 }
 0x27b   :  { %v713_v58 = vpop.xlane.xlu1 %712 }
 0x27c   :  { %1579 = vrcp.f32 %v713_v58  ;;  %v1541_v58 = vld [vmem:[#allocation4 + $0x80] ss:$8 sps:$4 sm:$0xff]  }
 0x27e   :  { %v1576_v55 = vpop.eup %1575 }
 0x27f   :  { %v716_v46 = vpop.xlane.xlu1 %715  ;;  %v725_v47 = vmul.f32 %v1576_v55, %v1978_v18  ;;  %v2152_v18 = vld [vmem:[#allocation4 + $0x60] ss:$8 sps:$4 sm:$0xff]   ;;  %v2174_v55 = vpop.f32.mrb[15].mxu0 }
 0x280   :  { %1581 = vrcp.f32 %v716_v46  ;;  %1314 = vmatpush1.bf16.xpose.msra.mxu0 %v2152_v18  ;;  %v1546_v46 = vld [vmem:[#allocation4 + $0x94] ss:$8 sps:$4 sm:$0xff]  }
 0x281   :  { %1315 = vmatprep.subr.bf16.mxu0 %v1540_v27 }
 0x282   :  { %v1578_v56 = vpop.eup %1577 }
 0x283   :  { %v309_v60 = vpop.xlane.xlu1 %308  ;;  %v726_v53 = vmul.f32 %v1578_v56, %v1982_v4 }
 0x284   :  { %v328_v61 = vmax.f32 %v309_v60, 0.0 }
 0x285   :  { %v730_v63 = vpack.c.bf16 %v726_v53, %v725_v47 }
 0x286   :  { %v1070_v0 = vrot.slane %v328_v61, 2  ;;  %v1580_v5 = vpop.eup %1579  ;;  %v1559_v61 = vld [vmem:[#allocation4 + $0xe0] ss:$8 sps:$4 sm:$0xff]  }
 0x287   :  { %1412 = vmatmul.mubr.msk.bf16.vlgmr.msra.gmra.mrb[0].mxu1 %vm673_vm1, %v730_v63  ;;  %v719_v1 = vpop.xlane.xlu1 %718  ;;  %v727_v7 = vmul.f32 %v1580_v5, %v1990_v30  ;;  %v1538_v30 = vld [vmem:[#allocation4 + $0x70] ss:$8 sps:$4 sm:$0xff]   ;;  %v1564_v5 = vld [vmem:[#allocation4 + $0xf4] ss:$8 sps:$4 sm:$0xff]  }
 0x288   :  { %1583 = vrcp.f32 %v719_v1  ;;  %v1071_v10 = vsel %vm1062_vm4, %v1068_v38, %v1070_v0  ;;  %799 = vmatprep.mubr.bf16.mxu1 %v1669_v62  ;;  %985 = vmatpush1.bf16.xpose.msra.mxu1 %v2109_v3 }
 0x289   :  { %1086 = vxpose.xlu1.b32.cont [4/7] (short) (narrow) %v1071_v10, 8  ;;  %986 = vmatprep.subr.bf16.mxu1 %v1522_v42 }
 0x28a   :  { %v1582_v4 = vpop.eup %1581  ;;  %1316 = vmatpush1.bf16.xpose.msra.mxu0 %v1538_v30 }
 0x28b   :  { %v312_v21 = vpop.xlane.xlu1 %311  ;;  %v728_v8 = vmul.f32 %v1582_v4, %v1998_v23 }
 0x28c   :  { %v329_v9 = vmax.f32 %v312_v21, 0.0 }
 0x28d   :  { %v731_v12 = vpack.c.bf16 %v728_v8, %v727_v7 }
 0x28e   :  { %v1072_v14 = vrot.slane %v329_v9, 2 }
 0x28f   :  { %1413 = vmatmul.mubr.msk.bf16.gmra.mrb[4].mxu1 %vm673_vm1, %v731_v12  ;;  %v317_v3 = vpop.xlane.xlu1 %316  ;;  %v621_v12 = vmax.f32 %v2174_v55, 0.0 }
 0x290   :  { %v330_v24 = vmax.f32 %v317_v3, 0.0  ;;  %v1073_v42 = vsel %vm1062_vm4, %v1070_v0, %v1072_v14  ;;  %809 = vmatprep.mubr.bf16.mxu1 %v1669_v62  ;;  %987 = vmatpush1.bf16.xpose.msra.mxu1 %v2112_v43  ;;  %v342_v43 = vpack.c.bf16 %v2018_v41, %v1988_v13  ;;  %v1544_v13 = vld [vmem:[#allocation4 + $0x90] ss:$8 sps:$4 sm:$0xff]   ;;  %v1547_v41 = vld [vmem:[#allocation4 + $0xa0] ss:$8 sps:$4 sm:$0xff]  }
 0x291   :  { %1087 = vxpose.xlu1.b32.cont [5/7] (short) (narrow) %v1073_v42, 8  ;;  %988 = vmatprep.subr.bf16.mxu1 %v2114_v6  ;;  %v1543_v6 = vld [vmem:[#allocation4 + $0x84] ss:$8 sps:$4 sm:$0xff]  }
 0x292   :  { %v1584_v23 = vpop.eup %1583  ;;  %v1074_v31 = vrot.slane %v330_v24, 2  ;;  %587 = vmatprep.mubr.bf16.mxu0 %v342_v43  ;;  %1317 = vmatprep.subr.bf16.mxu0 %v1543_v6 }
 0x293   :  { %v729_v38 = vmul.f32 %v1584_v23, %v2026_v59  ;;  %v344_v59 = vpack.c.bf16 %v2024_v50, %v2024_v50  ;;  %588 = vmatmul.mubr.bf16.gmra.mrb[20].mxu0 %v341_v45  ;;  %v1552_v50 = vld [vmem:[#allocation4 + $0xb4] ss:$8 sps:$4 sm:$0xff]   ;;  %v215_v8 = vpop.xlane.xlu1 %214 }
 0x294   :  { %v1075_v39 = vsel %vm1062_vm4, %v1072_v14, %v1074_v31  ;;  %1318 = vmatpush1.bf16.xpose.msra.mxu0 %v1541_v58  ;;  %v1183_v14 = vpack.c.bf16 %v621_v12, %v2066_v37 }
 0x295   :  { %1088 = vxpose.xlu1.b32.cont [6/7] (short) (narrow) %v1075_v39, 8  ;;  %v732_v44 = vpack.c.bf16 %v729_v38, %v729_v38  ;;  %597 = vmatprep.mubr.bf16.mxu0 %v344_v59  ;;  %v221_v39 = vpop.xlane.xlu0 %220 }
 0x296   :  { %1319 = vmatprep.subr.bf16.mxu0 %v1546_v46  ;;  %v1202_v24 = vrot.slane %v1183_v14, 1  ;;  %v237_v43 = vmax.f32 %v221_v39, 0.0 }
 0x297   :  { %1414 = vmatmul.mubr.msk.bf16.gmra.mrb[8].mxu1 %vm673_vm1, %v732_v44  ;;  %v218_v9 = vpop.xlane.xlu1 %217 }
 0x298   :  { %989 = vmatpush1.bf16.xpose.msra.mxu1 %v2118_v15  ;;  %v1555_v15 = vld [vmem:[#allocation4 + $0xc4] ss:$8 sps:$4 sm:$0xff]   ;;  %v236_v44 = vmax.f32 %v218_v9, 0.0 }
 0x299   :  { %1089 = vxpose.xlu1.b32.end [7/7] (short) (narrow) %v1074_v31, 8  ;;  %990 = vmatprep.subr.bf16.mxu1 %v2120_v16  ;;  %v1553_v16 = vld [vmem:[#allocation4 + $0xc0] ss:$8 sps:$4 sm:$0xff]   ;;  %v235_v31 = vmax.f32 %v215_v8, 0.0 }
 0x29b   :  { %598 = vmatmul.mubr.bf16.gmra.mrb[24].mxu0 %v343_v11  ;;  %v224_v3 = vpop.xlane.xlu1 %223 }
 0x29c   :  { %1320 = vmatpush1.bf16.xpose.msra.mxu0 %v1544_v13 }
 0x29d   :  { %1321 = vmatprep.subr.bf16.mxu0 %v1549_v40 }
 0x2a0   :  { %991 = vmatpush1.bf16.xpose.msra.mxu1 %v2124_v19  ;;  %v1558_v19 = vld [vmem:[#allocation4 + $0xd4] ss:$8 sps:$4 sm:$0xff]  }
 0x2a1   :  { %992 = vmatprep.subr.bf16.mxu1 %v2126_v20  ;;  %v1556_v20 = vld [vmem:[#allocation4 + $0xd0] ss:$8 sps:$4 sm:$0xff]  }
 0x2a4   :  { %1322 = vmatpush1.bf16.xpose.msra.mxu0 %v1547_v41 }
 0x2a5   :  { %1323 = vmatprep.subr.bf16.mxu0 %v1552_v50 }
 0x2a8   :  { %993 = vmatpush1.bf16.xpose.msra.mxu1 %v2130_v22  ;;  %v1561_v22 = vld [vmem:[#allocation4 + $0xe4] ss:$8 sps:$4 sm:$0xff]  }
 0x2a9   :  { %994 = vmatprep.subr.bf16.mxu1 %v2132_v29  ;;  %v620_v29 = vmax.f32 %v573_v57, 0.0 }
 0x2ab   :  { %v1182_v47 = vpack.c.bf16 %v620_v29, %v2054_v34  ;;  %v1562_v34 = vld [vmem:[#allocation4 + $0xf0] ss:$8 sps:$4 sm:$0xff]  }
 0x2ac   :  { %1324 = vmatpush1.bf16.xpose.msra.mxu0 %v1550_v49 }
 0x2ad   :  { %1325 = vmatprep.subr.bf16.mxu0 %v1555_v15 }
 0x2b0   :  { %995 = vmatpush1.bf16.xpose.msra.mxu1 %v2139_v26  ;;  %v579_v26 = vpop.f32.mrb[16].mxu0 }
 0x2b1   :  { %996 = vmatprep.subr.bf16.mxu1 %v2150_v17  ;;  %v622_v56 = vmax.f32 %v579_v26, 0.0  ;;  %v581_v60 = vpop.f32.mrb[17].mxu0 }
 0x2b2   :  { %v623_v53 = vmax.f32 %v581_v60, 0.0  ;;  %v583_v63 = vpop.f32.mrb[18].mxu0 }
 0x2b3   :  { %v624_v0 = vmax.f32 %v583_v63, 0.0  ;;  %v585_v1 = vpop.f32.mrb[19].mxu0 }
 0x2b4   :  { %1326 = vmatpush1.bf16.xpose.msra.mxu0 %v1553_v16  ;;  %v625_v10 = vmax.f32 %v585_v1, 0.0 }
 0x2b5   :  { %1327 = vmatprep.subr.bf16.mxu0 %v1558_v19  ;;  %v2186_v17 = vpack.c.bf16 %v624_v0, %v622_v56 }
 0x2b6   :  { %v2188_v4 = vpack.c.bf16 %v625_v10, %v623_v53 }
 0x2b7   :  { %v1200_v21 = vrot.slane %v2186_v17, 1 }
 0x2b8   :  { %997 = vmatpush1.bf16.xpose.msra.mxu1 %v2152_v18  ;;  %v1199_v18 = vrot.slane %v1182_v47, 1  ;;  %v1203_v42 = vrot.slane %v2188_v4, 1 }
 0x2b9   :  { %998 = vmatprep.subr.bf16.mxu1 %v1540_v27  ;;  %v229_v27 = vpop.xlane.xlu1 %228 }
 0x2ba   :  { %v1201_v7 = vsel %vm1198_vm5, %v1199_v18, %v1200_v21  ;;  %v239_v55 = vmax.f32 %v229_v27, 0.0 }
 0x2bc   :  { %1328 = vmatpush1.bf16.xpose.msra.mxu0 %v1556_v20 }
 0x2bd   :  { %1329 = vmatprep.subr.bf16.mxu0 %v1561_v22 }
 0x2c0   :  { %999 = vmatpush1.bf16.xpose.msra.mxu1 %v1538_v30  ;;  %v1204_v30 = vsel %vm1198_vm5, %v1202_v24, %v1203_v42 }
 0x2c1   :  { %1000 = vmatprep.subr.bf16.mxu1 %v1543_v6 }
 0x2c4   :  { %1330 = vmatpush1.bf16.xpose.msra.mxu0 %v1559_v61 }
 0x2c5   :  { %1331 = vmatprep.subr.bf16.mxu0 %v1564_v5 }
 0x2c8   :  { %1001 = vmatpush1.bf16.xpose.msra.mxu1 %v1541_v58  ;;  %v238_v58 = vmax.f32 %v224_v3, 0.0 }
 0x2c9   :  { %1002 = vmatprep.subr.bf16.mxu1 %v1546_v46 }
 0x2cc   :  { %1332 = vmatpush1.bf16.xpose.msra.mxu0 %v1562_v34 }
 0x2d0   :  { %1003 = vmatpush1.bf16.xpose.msra.mxu1 %v1544_v13 }
 0x2d1   :  { %1004 = vmatprep.subr.bf16.mxu1 %v1549_v40 }
 0x2d8   :  { %1005 = vmatpush1.bf16.xpose.msra.mxu1 %v1547_v41 }
 0x2d9   :  { %1006 = vmatprep.subr.bf16.mxu1 %v1552_v50 }
 0x2e0   :  { %1007 = vmatpush1.bf16.xpose.msra.mxu1 %v1550_v49 }
 0x2e1   :  { %1008 = vmatprep.subr.bf16.mxu1 %v1555_v15 }
 0x2e8   :  { %1009 = vmatpush1.bf16.xpose.msra.mxu1 %v1553_v16 }
 0x2e9   :  { %1010 = vmatprep.subr.bf16.mxu1 %v1558_v19 }
 0x2f0   :  { %1011 = vmatpush1.bf16.xpose.msra.mxu1 %v1556_v20 }
 0x2f1   :  { %1012 = vmatprep.subr.bf16.mxu1 %v1561_v22 }
 0x2f8   :  { %1013 = vmatpush1.bf16.xpose.msra.mxu1 %v1559_v61 }
 0x2f9   :  { %1014 = vmatprep.subr.bf16.mxu1 %v1564_v5 }
 0x300   :  { %1015 = vmatpush1.bf16.xpose.msra.mxu1 %v1562_v34 }
 0x301   :  { %v1099_v23 = vpop.trf.xlu1  ;;  %1234 = vmatprep.subr.bf16.mxu1 %v1204_v30 }
 0x302   :  { %v1118_v38 = vrot.slane %v1099_v23, %v1729_v2 }
 0x304   :  { %v2201_v37 = vmul.f32 %v1118_v38, %v235_v31  ;;  %v2205_v6 = vmul.f32 %v1118_v38, %v236_v44  ;;  %v2209_v59 = vmul.f32 %v1118_v38, %v237_v43  ;;  %v2213_v46 = vmul.f32 %v1118_v38, %v238_v58 }
 0x305   :  { %v2217_v13 = vmul.f32 %v1118_v38, %v239_v55 }
 0x306   :  { %v1124_v45 = vsel %vm673_vm1, %v2201_v37, -inf  ;;  %v1127_v57 = vsel %vm673_vm1, %v2205_v6, -inf  ;;  %v1130_v2 = vsel %vm673_vm1, %v2209_v59, -inf  ;;  %v1133_v11 = vsel %vm673_vm1, %v2213_v46, -inf }
 0x307   :  { %1125 = vmax.xlane.f32.xlu0 %v1124_v45  ;;  %v1136_v40 = vsel %vm686_vm2, %v2217_v13, -inf }
 0x30b   :  { %1128 = vmax.xlane.f32.xlu0 %v1127_v57 }
 0x30f   :  { %1131 = vmax.xlane.f32.xlu0 %v1130_v2 }
 0x313   :  { %1134 = vmax.xlane.f32.xlu0 %v1133_v11 }
 0x317   :  { %1137 = vmax.xlane.f32.xlu0 %v1136_v40 }
 0x35a   :  { %v791_v41 = vpop.f32.mrb[0].mxu1 }
 0x35b   :  { %v793_v50 = vpop.f32.mrb[1].mxu1 }
 0x35c   :  { %v795_v49 = vpop.f32.mrb[2].mxu1 }
 0x35d   :  { %v818_v15 = vpack.c.bf16 %v795_v49, %v791_v41  ;;  %v797_v16 = vpop.f32.mrb[3].mxu1 }
 0x35e   :  { %v819_v19 = vpack.c.bf16 %v797_v16, %v793_v50 }
 0x360   :  { %1016 = vmatprep.mubr.bf16.mxu1 %v819_v19 }
 0x361   :  { %1017 = vmatmul.mubr.bf16.vlgmr.msra.gmra.mrb[12].mxu1 %v818_v15 }
 0x362   :  { %1235 = vmatpush1.bf16.msra.mxu1 %v1201_v7  ;;  %v801_v20 = vpop.f32.mrb[4].mxu1 }
 0x363   :  { %v803_v22 = vpop.f32.mrb[5].mxu1 }
 0x364   :  { %v805_v29 = vpop.f32.mrb[6].mxu1 }
 0x365   :  { %v820_v26 = vpack.c.bf16 %v805_v29, %v801_v20  ;;  %v807_v56 = vpop.f32.mrb[7].mxu1 }
 0x366   :  { %v821_v60 = vpack.c.bf16 %v807_v56, %v803_v22  ;;  %v589_v1 = vpop.f32.mrb[20].mxu0 }
 0x367   :  { %v626_v10 = vmax.f32 %v589_v1, 0.0  ;;  %v591_v18 = vpop.f32.mrb[21].mxu0 }
 0x368   :  { %1026 = vmatprep.mubr.bf16.mxu1 %v821_v60  ;;  %v627_v34 = vmax.f32 %v591_v18, 0.0  ;;  %v593_v7 = vpop.f32.mrb[22].mxu0 }
 0x369   :  { %1027 = vmatmul.mubr.bf16.gmra.mrb[16].mxu1 %v820_v26  ;;  %v628_v8 = vmax.f32 %v593_v7, 0.0  ;;  %v595_v9 = vpop.f32.mrb[23].mxu0  ;;  %v1606_v7 = vld [vmem:[%s2364_s1 + $0x8] sm:$0xff] }
 0x36a   :  { %v811_v47 = vpop.f32.mrb[8].mxu1  ;;  %v629_v12 = vmax.f32 %v595_v9, 0.0 }
 0x36b   :  { %v813_v53 = vpop.f32.mrb[9].mxu1  ;;  %v822_v5 = vpack.c.bf16 %v811_v47, %v811_v47  ;;  %v1186_v14 = vpack.c.bf16 %v628_v8, %v626_v10  ;;  %v1605_v10 = vld [vmem:[%s2364_s1] sm:$0xff] }
 0x36c   :  { %v823_v61 = vpack.c.bf16 %v813_v53, %v813_v53  ;;  %v815_v63 = vpop.f32.mrb[10].mxu1  ;;  %v1187_v3 = vpack.c.bf16 %v629_v12, %v627_v34 }
 0x36d   :  { %v816_v0 = vpop.f32.mrb[11].mxu1  ;;  %v1205_v24 = vrot.slane %v1186_v14, 1  ;;  %v1607_v14 = vld [vmem:[%s2364_s1 + $0x10] sm:$0xff] }
 0x36e   :  { %1036 = vmatprep.mubr.bf16.mxu1 %v823_v61  ;;  %v1207_v27 = vrot.slane %v1187_v3, 1  ;;  %v599_v30 = vpop.f32.mrb[24].mxu0 }
 0x36f   :  { %v630_v23 = vmax.f32 %v599_v30, 0.0  ;;  %v601_v31 = vpop.f32.mrb[25].mxu0  ;;  %v1206_v38 = vsel %vm1198_vm5, %v1200_v21, %v1205_v24 }
 0x370   :  { %v631_v39 = vmax.f32 %v601_v31, 0.0  ;;  %v1208_v44 = vsel %vm1198_vm5, %v1203_v42, %v1207_v27  ;;  %v603_v43 = vpop.f32.mrb[26].mxu0 }
 0x371   :  { %1037 = vmatmul.mubr.bf16.gmra.mrb[20].mxu1 %v822_v5  ;;  %v1188_v45 = vpack.c.bf16 %v630_v23, %v630_v23  ;;  %1236 = vmatprep.subr.bf16.mxu1 %v1208_v44  ;;  %v604_v57 = vpop.f32.mrb[27].mxu0  ;;  %v1610_v43 = vld [vmem:[%s2364_s1 + $0x28] sm:$0xff] }
 0x372   :  { %1266 = vmatprep.mubr.bf16.mxu1 %v1669_v62  ;;  %v1189_v58 = vpack.c.bf16 %v631_v39, %v631_v39  ;;  %1237 = vmatpush1.bf16.msra.mxu1 %v1206_v38  ;;  %v1609_v38 = vld [vmem:[%s2364_s1 + $0x20] sm:$0xff] }
 0x373   :  { %v1209_v2 = vrot.slane %v1188_v45, 1 }
 0x374   :  { %v1211_v55 = vrot.slane %v1189_v58, 1 }
 0x375   :  { %v1210_v11 = vsel %vm1198_vm5, %v1205_v24, %v1209_v2  ;;  %v1229_v0 = vsel %vm750_vm3, %v1209_v2, 0 }
 0x376   :  { %v1212_v40 = vsel %vm1198_vm5, %v1207_v27, %v1211_v55  ;;  %v1608_v27 = vld [vmem:[%s2364_s1 + $0x18] sm:$0xff] }
 0x377   :  { %1238 = vmatprep.subr.bf16.mxu1 %v1212_v40 }
 0x378   :  { %1239 = vmatpush1.bf16.msra.mxu1 %v1210_v11 }
 0x379   :  { %1447 = vmatprep.subr.msk.bf16.mxu1 %vm750_vm3, %v1211_v55  ;;  %v1611_v55 = vld [vmem:[%s2364_s1 + $0x30] sm:$0xff] }
 0x37c   :  { %1241 = vmatpush1.bf16.msra.mxu1 %v1229_v0 }
 0x394   :  { %v1126_v17 = vpop.xlane.xlu0 %1125 }
 0x395   :  { %v1139_v4 = vsub.f32 %v2201_v37, %v1126_v17  ;;  %v1612_v17 = vld [vmem:[%s2364_s1 + $0x38] sm:$0xff] }
 0x397   :  { %v1144_v21 = vmul.f32 1.442695, %v1139_v4 }
 0x398   :  { %v1129_v42 = vpop.xlane.xlu0 %1128 }
 0x399   :  { %1585 = vpow2.f32 %v1144_v21  ;;  %v1140_v41 = vsub.f32 %v2205_v6, %v1129_v42 }
 0x39b   :  { %v1146_v50 = vmul.f32 1.442695, %v1140_v41 }
 0x39c   :  { %v1132_v49 = vpop.xlane.xlu0 %1131 }
 0x39d   :  { %1587 = vpow2.f32 %v1146_v50  ;;  %v1141_v15 = vsub.f32 %v2209_v59, %v1132_v49 }
 0x39f   :  { %v1148_v16 = vmul.f32 1.442695, %v1141_v15 }
 0x3a0   :  { %v1135_v19 = vpop.xlane.xlu0 %1134 }
 0x3a1   :  { %1589 = vpow2.f32 %v1148_v16  ;;  %v1142_v20 = vsub.f32 %v2213_v46, %v1135_v19  ;;  %v1613_v16 = vld [vmem:[%s2364_s1 + $0x40] sm:$0xf] }
 0x3a3   :  { %v2235_v22 = vpop.eup %1585  ;;  %v1150_v29 = vmul.f32 1.442695, %v1142_v20 }
 0x3a4   :  { %v1138_v26 = vpop.xlane.xlu0 %1137  ;;  %v1154_v37 = vsel %vm673_vm1, %v2235_v22, 0.0 }
 0x3a5   :  { %1591 = vpow2.f32 %v1150_v29  ;;  %v1143_v6 = vsub.f32 %v2217_v13, %v1138_v26  ;;  %1155 = vadd.xlane.f32.xlu0 %v1154_v37  ;;  %v1614_v29 = vld [vmem:[%s2364_s1 + $0x48] sm:$0xf] }
 0x3a7   :  { %v1588_v56 = vpop.eup %1587  ;;  %v1152_v60 = vmul.f32 1.442695, %v1143_v6 }
 0x3a8   :  { %v1157_v59 = vsel %vm673_vm1, %v1588_v56, 0.0 }
 0x3a9   :  { %1593 = vpow2.f32 %v1152_v60  ;;  %1158 = vadd.xlane.f32.xlu0 %v1157_v59 }
 0x3ab   :  { %v2241_v47 = vpop.eup %1589 }
 0x3ac   :  { %v1160_v46 = vsel %vm673_vm1, %v2241_v47, 0.0 }
 0x3ad   :  { %1161 = vadd.xlane.f32.xlu0 %v1160_v46 }
 0x3af   :  { %v2245_v53 = vpop.eup %1591 }
 0x3b0   :  { %v1163_v61 = vsel %vm673_vm1, %v2245_v53, 0.0 }
 0x3b1   :  { %1164 = vadd.xlane.f32.xlu0 %v1163_v61 }
 0x3b3   :  { %v2249_v13 = vpop.eup %1593 }
 0x3b4   :  { %v1166_v63 = vsel %vm686_vm2, %v2249_v13, 0.0 }
 0x3b5   :  { %1167 = vadd.xlane.f32.xlu0 %v1166_v63 }
 0x432   :  { %v1156_v1 = vpop.xlane.xlu0 %1155 }
 0x433   :  { %1595 = vrcp.f32 %v1156_v1 }
 0x434   :  { %v1018_v5 = vpop.f32.mrb[12].mxu1 }
 0x435   :  { %v1019_v18 = vadd.f32 %v1605_v10, %v1018_v5  ;;  %v1020_v34 = vpop.f32.mrb[13].mxu1 }
 0x436   :  { %v1021_v8 = vadd.f32 %v1606_v7, %v1020_v34  ;;  %v1022_v9 = vpop.f32.mrb[14].mxu1  ;;  %v1159_v12 = vpop.xlane.xlu0 %1158 }
 0x437   :  { %1045 = vst [vmem:[%s2369_s6] sm:$0xff] %v1019_v18  ;;  %v1023_v3 = vadd.f32 %v1607_v14, %v1022_v9  ;;  %1597 = vrcp.f32 %v1159_v12  ;;  %v1024_v24 = vpop.f32.mrb[15].mxu1 }
 0x438   :  { %1046 = vst [vmem:[%s2369_s6 + $0x8] sm:$0xff] %v1021_v8  ;;  %v1025_v30 = vadd.f32 %v1608_v27, %v1024_v24 }
 0x439   :  { %1047 = vst [vmem:[%s2369_s6 + $0x10] sm:$0xff] %v1023_v3 }
 0x43a   :  { %1048 = vst [vmem:[%s2369_s6 + $0x18] sm:$0xff] %v1025_v30  ;;  %v1162_v23 = vpop.xlane.xlu0 %1161 }
 0x43b   :  { %1599 = vrcp.f32 %v1162_v23 }
 0x43c   :  { %v1028_v31 = vpop.f32.mrb[16].mxu1 }
 0x43d   :  { %v1029_v39 = vadd.f32 %v1609_v38, %v1028_v31  ;;  %v1030_v44 = vpop.f32.mrb[17].mxu1  ;;  %v1596_v2 = vpop.eup %1595 }
 0x43e   :  { %v1031_v45 = vadd.f32 %v1610_v43, %v1030_v44  ;;  %v1032_v57 = vpop.f32.mrb[18].mxu1  ;;  %v1165_v58 = vpop.xlane.xlu0 %1164  ;;  %v1174_v42 = vmul.f32 %v1596_v2, %v2235_v22 }
 0x43f   :  { %1049 = vst [vmem:[%s2369_s6 + $0x20] sm:$0xff] %v1029_v39  ;;  %v1033_v11 = vadd.f32 %v1611_v55, %v1032_v57  ;;  %1601 = vrcp.f32 %v1165_v58  ;;  %v1034_v40 = vpop.f32.mrb[19].mxu1 }
 0x440   :  { %1050 = vst [vmem:[%s2369_s6 + $0x28] sm:$0xff] %v1031_v45  ;;  %v1035_v4 = vadd.f32 %v1612_v17, %v1034_v40 }
 0x441   :  { %v1598_v21 = vpop.eup %1597  ;;  %1051 = vst [vmem:[%s2369_s6 + $0x30] sm:$0xff] %v1033_v11 }
 0x442   :  { %v1175_v41 = vmul.f32 %v1598_v21, %v1588_v56  ;;  %1052 = vst [vmem:[%s2369_s6 + $0x38] sm:$0xff] %v1035_v4  ;;  %v1168_v50 = vpop.xlane.xlu0 %1167 }
 0x443   :  { %1603 = vrcp.f32 %v1168_v50 }
 0x444   :  { %v1179_v49 = vpack.c.bf16 %v1175_v41, %v1174_v42  ;;  %v1038_v15 = vpop.f32.mrb[20].mxu1 }
 0x445   :  { %v1039_v19 = vadd.f32 %v1613_v16, %v1038_v15  ;;  %v1040_v20 = vpop.f32.mrb[21].mxu1  ;;  %v1600_v37 = vpop.eup %1599 }
 0x446   :  { %v1041_v22 = vadd.f32 %v1614_v29, %v1040_v20  ;;  %v1042_v26 = vpop.f32.mrb[22].mxu1  ;;  %1448 = vmatmul.mubr.msk.bf16.vlgmr.msra.gmra.mrb[24].mxu1 %vm673_vm1, %v1179_v49  ;;  %v1176_v60 = vmul.f32 %v1600_v37, %v2241_v47 }
 0x447   :  { %1053 = vst [vmem:[%s2369_s6 + $0x40] sm:$0xf] %v1039_v19  ;;  %v1043_v6 = vpop.f32.mrb[23].mxu1  ;;  %1276 = vmatprep.mubr.bf16.mxu1 %v1669_v62 }
 0x448   :  { %1054 = vst [vmem:[%s2369_s6 + $0x48] sm:$0xf] %v1041_v22 }
 0x449   :  { %v1602_v56 = vpop.eup %1601 }
 0x44a   :  { %v1177_v59 = vmul.f32 %v1602_v56, %v2245_v53 }
 0x44c   :  { %v1180_v46 = vpack.c.bf16 %v1177_v59, %v1176_v60 }
 0x44d   :  { %v1604_v61 = vpop.eup %1603 }
 0x44e   :  { %1449 = vmatmul.mubr.msk.bf16.gmra.mrb[28].mxu1 %vm673_vm1, %v1180_v46  ;;  %v1178_v63 = vmul.f32 %v1604_v61, %v2249_v13 }
 0x44f   :  { %1286 = vmatprep.mubr.bf16.mxu1 %v1669_v62 }
 0x450   :  { %v1181_v0 = vpack.c.bf16 %v1178_v63, %v1178_v63 }
 0x456   :  { %1450 = vmatmul.mubr.msk.bf16.gmra.mrb[32].mxu1 %vm673_vm1, %v1181_v0 }
 0x519   :  { %v1268_v1 = vpop.f32.mrb[24].mxu1 }
 0x51a   :  { %v1270_v5 = vpop.f32.mrb[25].mxu1 }
 0x51b   :  { %v1272_v10 = vpop.f32.mrb[26].mxu1 }
 0x51c   :  { %v1295_v18 = vpack.c.bf16 %v1272_v10, %v1268_v1  ;;  %v1274_v34 = vpop.f32.mrb[27].mxu1 }
 0x51d   :  { %v1296_v7 = vpack.c.bf16 %v1274_v34, %v1270_v5 }
 0x51f   :  { %1333 = vmatprep.mubr.bf16.mxu0 %v1296_v7 }
 0x520   :  { %1334 = vmatmul.mubr.bf16.vlgmr.msra.gmra.mrb[28].mxu0 %v1295_v18 }
 0x521   :  { %v1278_v47 = vpop.f32.mrb[28].mxu1 }
 0x522   :  { %v1280_v53 = vpop.f32.mrb[29].mxu1 }
 0x523   :  { %v1282_v8 = vpop.f32.mrb[30].mxu1 }
 0x524   :  { %v1297_v9 = vpack.c.bf16 %v1282_v8, %v1278_v47  ;;  %v1284_v12 = vpop.f32.mrb[31].mxu1 }
 0x525   :  { %v1298_v14 = vpack.c.bf16 %v1284_v12, %v1280_v53 }
 0x527   :  { %1343 = vmatprep.mubr.bf16.mxu0 %v1298_v14 }
 0x528   :  { %1344 = vmatmul.mubr.bf16.gmra.mrb[32].mxu0 %v1297_v9 }
 0x529   :  { %v1288_v62 = vpop.f32.mrb[32].mxu1 }
 0x52a   :  { %v1290_v13 = vpop.f32.mrb[33].mxu1  ;;  %v1299_v30 = vpack.c.bf16 %v1288_v62, %v1288_v62 }
 0x52b   :  { %v1300_v3 = vpack.c.bf16 %v1290_v13, %v1290_v13  ;;  %v1292_v24 = vpop.f32.mrb[34].mxu1 }
 0x52c   :  { %v1293_v27 = vpop.f32.mrb[35].mxu1 }
 0x52d   :  { %1353 = vmatprep.mubr.bf16.mxu0 %v1300_v3 }
 0x530   :  { %1354 = vmatmul.mubr.bf16.gmra.mrb[36].mxu0 %v1299_v30 }
 0x5f3   :  { %v1335_v23 = vpop.f32.mrb[28].mxu0 }
 0x5f4   :  { %v1336_v31 = vadd.f32 %v1335_v23, %v2043_v25  ;;  %v1337_v38 = vpop.f32.mrb[29].mxu0 }
 0x5f5   :  { %v1338_v39 = vadd.f32 %v1337_v38, %v2048_v28  ;;  %v1339_v44 = vpop.f32.mrb[30].mxu0 }
 0x5f6   :  { %1451 = vst [vmem:[%s2369_s6 + $0x50] sm:$0xff] %v1336_v31  ;;  %v1340_v43 = vadd.f32 %v1339_v44, %v2059_v33  ;;  %v1341_v45 = vpop.f32.mrb[31].mxu0 }
 0x5f7   :  { %1452 = vst [vmem:[%s2369_s6 + $0x58] sm:$0xff] %v1338_v39  ;;  %v1342_v57 = vadd.f32 %v1341_v45, %v2064_v36 }
 0x5f8   :  { %1453 = vst [vmem:[%s2369_s6 + $0x60] sm:$0xff] %v1340_v43 }
 0x5f9   :  { %1454 = vst [vmem:[%s2369_s6 + $0x68] sm:$0xff] %v1342_v57 }
 0x5fb   :  { %v1345_v25 = vpop.f32.mrb[32].mxu0 }
 0x5fc   :  { %v1346_v28 = vadd.f32 %v1345_v25, %v2003_v35  ;;  %v1347_v58 = vpop.f32.mrb[33].mxu0 }
 0x5fd   :  { %v1348_v33 = vadd.f32 %v1347_v58, %v2008_v32  ;;  %v1349_v2 = vpop.f32.mrb[34].mxu0 }
 0x5fe   :  { %1455 = vst [vmem:[%s2369_s6 + $0x70] sm:$0xff] %v1346_v28  ;;  %v1350_v36 = vadd.f32 %v1349_v2, %v2079_v48  ;;  %v1351_v55 = vpop.f32.mrb[35].mxu0 }
 0x5ff   :  { %1456 = vst [vmem:[%s2369_s6 + $0x78] sm:$0xff] %v1348_v33  ;;  %v1352_v11 = vadd.f32 %v1351_v55, %v2084_v51 }
 0x600   :  { %1457 = vst [vmem:[%s2369_s6 + $0x80] sm:$0xff] %v1350_v36 }
 0x601   :  { %1458 = vst [vmem:[%s2369_s6 + $0x88] sm:$0xff] %v1352_v11 }
 0x603   :  { %v1355_v35 = vpop.f32.mrb[36].mxu0 }
 0x604   :  { %v1356_v32 = vadd.f32 %v1355_v35, %v2090_v52  ;;  %v1357_v40 = vpop.f32.mrb[37].mxu0 }
 0x605   :  { %v1358_v48 = vadd.f32 %v1357_v40, %v2095_v54  ;;  %v1359_v17 = vpop.f32.mrb[38].mxu0 }
 0x606   :  { %1459 = vst [vmem:[%s2369_s6 + $0x90] sm:$0xf] %v1356_v32  ;;  %v1360_v51 = vpop.f32.mrb[39].mxu0 }
 0x607   :  { %1460 = vst [vmem:[%s2369_s6 + $0x98] sm:$0xf] %v1358_v48 }
 0x608   :  { %1377 = vsyncpa [#allocation3], 1 }
 0x609   :  { %1378 = vsyncpa [#allocation5], 1 }

</bundles_post_ra>
